<compile_context>
chip_gen: v6e
topology: v6e:2x2x1
jax: 0.10.0
libtpu: 0.0.40
codegen_flags: <defaults>
</compile_context>

<pallas_src>
import jax
import jax.numpy as jnp
from jax.experimental import pallas as pl
from jax.experimental.pallas import tpu as pltpu

# Small, module-consistent dims (module defaults are 256/256/256; the per-axis
# displacement heads are hard-coded to 64 hidden units in the module).
AUDIO_DIM = 32
MESH_DIM = 32
HIDDEN_DIM = 32
PRED_DIM = 64

MAX_TILE_N = 8192                        # max vertices per grid step
CHUNK = 512                              # lanes per in-kernel compute chunk
VMEM_LIMIT_BYTES = 32 * 1024 * 1024      # safe on v5e/v6e/v7x


def _round_up(x, m):
    return (x + m - 1) // m * m


def _leaky(x):
    return jnp.where(x > 0, x, 0.2 * x)


# ---------------------------------------------------------------------------
# Micro kernel: per-clip fusion MLP -> column bias for vertex layer 1
# ---------------------------------------------------------------------------
def _fusion_kernel(audio_ref, mg_ref, f1_wa_ref, f1_wm_ref, f1_b_ref,
                   f2_w_ref, f2_b_ref, v1_wg_ref, v1_b_ref, cb_ref):
    f32 = jnp.float32
    h = (jnp.dot(audio_ref[...], f1_wa_ref[...], preferred_element_type=f32)
         + jnp.dot(mg_ref[...], f1_wm_ref[...], preferred_element_type=f32)
         + f1_b_ref[...])
    h = _leaky(h)                                              # Dropout(0.3) = id (eval)
    fused = _leaky(jnp.dot(h, f2_w_ref[...], preferred_element_type=f32)
                   + f2_b_ref[...])                            # (B, H)
    # Fold the "expanded" global features of vertex layer 1 into a per-clip
    # bias:  cbias = fused @ W1[mesh:, :] + b1   (removes the jnp.repeat
    # stream and one K=MESH_DIM matmul from the streaming hot path).
    cb_ref[...] = (jnp.dot(fused, v1_wg_ref[...], preferred_element_type=f32)
                   + v1_b_ref[...])


def _fusion_cbias(kp, audio, mesh_global):
    B = audio.shape[0]
    cb = pl.pallas_call(
        _fusion_kernel,
        out_shape=jax.ShapeDtypeStruct((B, HIDDEN_DIM), jnp.float32),
    )(audio, mesh_global, kp["f1_wa"], kp["f1_wm"], kp["f1_b"],
      kp["f2_w"], kp["f2_b"], kp["v1_wg"], kp["v1_b"])
    return cb.reshape(B, HIDDEN_DIM, 1)                        # per-clip (H, 1) column


# ---------------------------------------------------------------------------
# Streaming kernel: per-vertex stack, feature-major / lane-dense, bf16 MXU
# ---------------------------------------------------------------------------
def _vertex_kernel(vf_ref, cbias_ref, w_ref, b_ref, p2w_ref, p2b_ref, out_ref):
    H = HIDDEN_DIM
    f32, bf16 = jnp.float32, jnp.bfloat16

    cbias = cbias_ref[...]                  # (H, 1)   f32  per-clip bias column
    w1v = w_ref[0:H, :]                     # (H, M)   bf16  vertex part of layer 1
    w2 = w_ref[H:2 * H, :]                  # (H, H)   bf16  layer 2
    p1w = w_ref[2 * H:, :]                  # (3P, H)  bf16  packed x/y/z layer 1
    b2 = b_ref[0:H, :]                      # (H, 1)   f32
    p1b = b_ref[H:, :]                      # (3P, 1)  f32
    p2w = p2w_ref[...]                      # (3, 3P)  bf16  packed x/y/z layer 2
    p2b = p2b_ref[...]                      # (3, 1)   f32

    tile_n = vf_ref.shape[1]
    # Statically unrolled chunk loop: chunk-sized intermediates are consumed
    # immediately instead of staging full (32/32/192, TILE_N) f32 tensors in
    # VMEM (store-slot relief; see perf review).
    for c in range(tile_n // CHUNK):
        sl = pl.ds(c * CHUNK, CHUNK)
        vfc = vf_ref[:, sl]                                               # (M, C) bf16
        h1 = jnp.dot(w1v, vfc, preferred_element_type=f32) + cbias        # (H, C) f32
        h1 = jnp.maximum(h1, 0.0).astype(bf16)                            # ReLU; Dropout(0.2)=id
        h2 = jnp.dot(w2, h1, preferred_element_type=f32) + b2
        h2 = jnp.maximum(h2, 0.0).astype(bf16)                            # (H, C)
        hp = jnp.dot(p1w, h2, preferred_element_type=f32) + p1b
        hp = jnp.maximum(hp, 0.0).astype(bf16)                            # (3P, C)
        out = jnp.dot(p2w, hp, preferred_element_type=f32) + p2b          # (3, C) f32
        out_ref[:, sl] = out.astype(out_ref.dtype)                        # lane-dense store


# ---------------------------------------------------------------------------
# Wrapper
# ---------------------------------------------------------------------------
def mesh_displacement_forward(kp, audio, mesh_global, mesh_vertex):
    """Pallas forward; semantics match MeshDisplacementPredictor.forward (eval)."""
    B, A = audio.shape
    M = mesh_global.shape[1]
    N, Mv = mesh_vertex.shape
    assert A == AUDIO_DIM and M == MESH_DIM and Mv == MESH_DIM and N % B == 0
    V = N // B
    H, P3 = HIDDEN_DIM, 3 * PRED_DIM

    # Per-clip fusion MLP -> column bias for vertex layer 1 (micro kernel).
    cbias = _fusion_cbias(kp, audio, mesh_global)              # (B, H, 1) f32

    # Tile geometry: balanced tiles per clip, each a multiple of CHUNK lanes.
    J = pl.cdiv(V, MAX_TILE_N)
    TILE_N = _round_up(pl.cdiv(V, J), CHUNK)
    V_pad = J * TILE_N

    # Feature-major bf16 vertex stream: bf16 cast + transpose (+ tail pad) fuse
    # into a single XLA copy, replacing the old row-major pad round trip.
    vf = jnp.transpose(mesh_vertex.reshape(B, V, M).astype(jnp.bfloat16), (0, 2, 1))
    if V_pad != V:
        vf = jnp.pad(vf, ((0, 0), (0, 0), (0, V_pad - V)))

    def res(shape):   # fully-resident block (constant block index)
        return pl.BlockSpec(shape, lambda b, j: (0,) * len(shape))

    out3 = pl.pallas_call(
        _vertex_kernel,
        out_shape=jax.ShapeDtypeStruct((B, 3, V_pad), jnp.float32),
        grid_spec=pltpu.PrefetchScalarGridSpec(
            num_scalar_prefetch=0,
            grid=(B, J),
            in_specs=[
                pl.BlockSpec((None, M, TILE_N), lambda b, j: (b, 0, j)),  # vertex stream (bf16)
                pl.BlockSpec((None, H, 1), lambda b, j: (b, 0, 0)),       # per-clip bias column
                res((2 * H + P3, H)),                                     # [w1v_t; w2_t; p1_w_t] bf16
                res((H + P3, 1)),                                         # [v2_b; p1_b] columns f32
                res((3, P3)),                                             # packed x/y/z head bf16
                res((3, 1)),                                              # packed head bias f32
            ],
            out_specs=pl.BlockSpec((None, 3, TILE_N), lambda b, j: (b, 0, j)),
        ),
        compiler_params=pltpu.CompilerParams(
            dimension_semantics=("parallel", "parallel"),
            vmem_limit_bytes=VMEM_LIMIT_BYTES),
    )(vf, cbias, kp["w_stack"], kp["b_stack"], kp["p2_w"], kp["p2_b"])

    out = out3[:, :, :V]                                    # drop padded columns
    return jnp.transpose(out, (0, 2, 1)).reshape(N, 3)      # (N, 3)


# ---------------------------------------------------------------------------
# Parameters: PyTorch-style originals + packed kernel layout
# ---------------------------------------------------------------------------
def init_params(key):
    """PyTorch nn.Linear-style uniform init; original (untransformed) layout."""
    keys = jax.random.split(key, 10)

    def lin(k, fan_in, fan_out):
        kw, kb = jax.random.split(k)
        bound = 1.0 / jnp.sqrt(jnp.float32(fan_in))
        w = jax.random.uniform(kw, (fan_in, fan_out), jnp.float32, -bound, bound)
        b = jax.random.uniform(kb, (1, fan_out), jnp.float32, -bound, bound)
        return w, b

    A, M, H, P = AUDIO_DIM, MESH_DIM, HIDDEN_DIM, PRED_DIM
    f1_w, f1_b = lin(keys[0], A + M, H)
    f2_w, f2_b = lin(keys[1], H, H)
    v1_w, v1_b = lin(keys[2], M + H, H)
    v2_w, v2_b = lin(keys[3], H, H)
    x1_w, x1_b = lin(keys[4], H, P)
    x2_w, x2_b = lin(keys[5], P, 1)
    y1_w, y1_b = lin(keys[6], H, P)
    y2_w, y2_b = lin(keys[7], P, 1)
    z1_w, z1_b = lin(keys[8], H, P)
    z2_w, z2_b = lin(keys[9], P, 1)
    return dict(f1_w=f1_w, f1_b=f1_b, f2_w=f2_w, f2_b=f2_b,
                v1_w=v1_w, v1_b=v1_b, v2_w=v2_w, v2_b=v2_b,
                x1_w=x1_w, x1_b=x1_b, x2_w=x2_w, x2_b=x2_b,
                y1_w=y1_w, y1_b=y1_b, y2_w=y2_w, y2_b=y2_b,
                z1_w=z1_w, z1_b=z1_b, z2_w=z2_w, z2_b=z2_b)


def pack_params(p):
    """Kernel-layout params: bf16 packed/transposed MXU weights, f32 bias
    columns, and f32 fusion-MLP weights for the micro kernel."""
    A, M, H, P = AUDIO_DIM, MESH_DIM, HIDDEN_DIM, PRED_DIM
    assert M == H, "w_stack packing assumes mesh_dim == hidden_dim"
    p1_w = jnp.concatenate([p["x1_w"], p["y1_w"], p["z1_w"]], axis=1)     # (H, 3P)
    p1_b = jnp.concatenate([p["x1_b"], p["y1_b"], p["z1_b"]], axis=1)     # (1, 3P)
    p2_w = jnp.zeros((3, 3 * P), jnp.float32)
    p2_w = p2_w.at[0, 0 * P:1 * P].set(p["x2_w"][:, 0])
    p2_w = p2_w.at[1, 1 * P:2 * P].set(p["y2_w"][:, 0])
    p2_w = p2_w.at[2, 2 * P:3 * P].set(p["z2_w"][:, 0])
    p2_b = jnp.concatenate([p["x2_b"], p["y2_b"], p["z2_b"]], axis=1).T   # (3, 1)
    w_stack = jnp.concatenate([p["v1_w"][:M].T,      # vertex part of layer 1 (H, M)
                               p["v2_w"].T,          # layer 2              (H, H)
                               p1_w.T], axis=0)      # packed x/y/z layer 1 (3P, H)
    b_stack = jnp.concatenate([p["v2_b"].T, p1_b.T], axis=0)              # (H+3P, 1)
    return dict(
        # fusion micro-kernel (f32)
        f1_wa=p["f1_w"][:A], f1_wm=p["f1_w"][A:], f1_b=p["f1_b"],
        f2_w=p["f2_w"], f2_b=p["f2_b"], v1_wg=p["v1_w"][M:], v1_b=p["v1_b"],
        # streaming vertex kernel (bf16 MXU operands, f32 bias columns)
        w_stack=w_stack.astype(jnp.bfloat16), b_stack=b_stack,
        p2_w=p2_w.astype(jnp.bfloat16), p2_b=p2_b)


# ---------------------------------------------------------------------------
# References
# ---------------------------------------------------------------------------
def reference_forward(p, audio, mesh_global, mesh_vertex):
    """Pure-JAX f32 mirror of the PyTorch forward (eval mode)."""
    B = audio.shape[0]
    V = mesh_vertex.shape[0] // B
    gf = jnp.concatenate([audio, mesh_global], axis=1)
    h = _leaky(gf @ p["f1_w"] + p["f1_b"])
    fused = _leaky(h @ p["f2_w"] + p["f2_b"])
    expanded = jnp.repeat(fused, V, axis=0)
    vg = jnp.concatenate([mesh_vertex, expanded], axis=1)
    h = jnp.maximum(vg @ p["v1_w"] + p["v1_b"], 0.0)
    h = jnp.maximum(h @ p["v2_w"] + p["v2_b"], 0.0)
    x = jnp.maximum(h @ p["x1_w"] + p["x1_b"], 0.0) @ p["x2_w"] + p["x2_b"]
    y = jnp.maximum(h @ p["y1_w"] + p["y1_b"], 0.0) @ p["y2_w"] + p["y2_b"]
    z = jnp.maximum(h @ p["z1_w"] + p["z1_b"], 0.0) @ p["z2_w"] + p["z2_b"]
    return jnp.concatenate([x, y, z], axis=1)


def reference_forward_mixed(p, audio, mesh_global, mesh_vertex):
    """Pure-JAX mirror of the kernel's dtype policy (bf16 MXU operands, f32
    accumulate, f32 bias-add/ReLU) for the tight correctness check."""
    def mm(x, w):
        return jnp.dot(x.astype(jnp.bfloat16), w.astype(jnp.bfloat16),
                       preferred_element_type=jnp.float32)
    B = audio.shape[0]
    V = mesh_vertex.shape[0] // B
    M = MESH_DIM
    gf = jnp.concatenate([audio, mesh_global], axis=1)
    h = _leaky(gf @ p["f1_w"] + p["f1_b"])
    fused = _leaky(h @ p["f2_w"] + p["f2_b"])                  # f32, matches micro kernel
    cbias = fused @ p["v1_w"][M:] + p["v1_b"]                  # (B, H) f32
    vf = mesh_vertex.reshape(B, V, M)
    h = jnp.maximum(mm(vf, p["v1_w"][:M]) + cbias[:, None, :], 0.0)
    h = jnp.maximum(mm(h, p["v2_w"]) + p["v2_b"], 0.0)
    x = mm(jnp.maximum(mm(h, p["x1_w"]) + p["x1_b"], 0.0), p["x2_w"]) + p["x2_b"]
    y = mm(jnp.maximum(mm(h, p["y1_w"]) + p["y1_b"], 0.0), p["y2_w"]) + p["y2_b"]
    z = mm(jnp.maximum(mm(h, p["z1_w"]) + p["z1_b"], 0.0), p["z2_w"]) + p["z2_b"]
    return jnp.concatenate([x, y, z], axis=-1).reshape(-1, 3)


if __name__ == "__main__":
    key = jax.random.PRNGKey(0)
    k_par, k_a, k_g, k_v = jax.random.split(key, 4)

    B, V = 2, 1000                      # 2 clips x 1000 vertices (exercises tail padding)
    N = B * V
    params = init_params(k_par)
    kparams = pack_params(params)
    audio = jax.random.normal(k_a, (B, AUDIO_DIM), jnp.float32)
    mesh_global = jax.random.normal(k_g, (B, MESH_DIM), jnp.float32)
    mesh_vertex = jax.random.normal(k_v, (N, MESH_DIM), jnp.float32)

    fwd = jax.jit(mesh_displacement_forward)
    out = jax.block_until_ready(fwd(kparams, audio, mesh_global, mesh_vertex))
    assert out.shape == (N, 3), out.shape

    # Tight check: kernel vs pure-JAX mirror of the same dtype policy.
    ref_mixed = reference_forward_mixed(params, audio, mesh_global, mesh_vertex)
    err_mixed = float(jnp.max(jnp.abs(out - ref_mixed)))
    assert jnp.allclose(out, ref_mixed, atol=5e-3, rtol=5e-3), err_mixed

    # Loose check: kernel vs full-f32 module semantics (explicit bf16
    # MXU-operand rounding budget per the perf review).
    ref32 = reference_forward(params, audio, mesh_global, mesh_vertex)
    err32 = float(jnp.max(jnp.abs(out - ref32)))
    assert jnp.allclose(out, ref32, atol=8e-2, rtol=8e-2), err32

    print("KERNEL_OK")
</pallas_src>

<mosaic_0001>
module attributes {stable_mosaic.version = 11 : i64} {
  func.func @_fusion_kernel(%arg0: memref<2x32xf32, #tpu.memory_space<vmem>>, %arg1: memref<2x32xf32, #tpu.memory_space<vmem>>, %arg2: memref<32x32xf32, #tpu.memory_space<vmem>>, %arg3: memref<32x32xf32, #tpu.memory_space<vmem>>, %arg4: memref<1x32xf32, #tpu.memory_space<vmem>>, %arg5: memref<32x32xf32, #tpu.memory_space<vmem>>, %arg6: memref<1x32xf32, #tpu.memory_space<vmem>>, %arg7: memref<32x32xf32, #tpu.memory_space<vmem>>, %arg8: memref<1x32xf32, #tpu.memory_space<vmem>>, %arg9: memref<2x32xf32, #tpu.memory_space<vmem>>) attributes {dimension_semantics = [], scalar_prefetch = 0 : i64, scratch_operands = 0 : i64, tpu.core_type = #tpu.core_type<tc>} {
    %c0 = arith.constant 0 : index
    %c0_0 = arith.constant 0 : index
    %0 = vector.load %arg0[%c0, %c0_0] : memref<2x32xf32, #tpu.memory_space<vmem>>, vector<2x32xf32>
    %c0_1 = arith.constant 0 : index
    %c0_2 = arith.constant 0 : index
    %1 = vector.load %arg2[%c0_1, %c0_2] : memref<32x32xf32, #tpu.memory_space<vmem>>, vector<32x32xf32>
    %cst = arith.constant dense<0.000000e+00> : vector<2x32xf32>
    %2 = tpu.matmul %0, %1, %cst {dimension_numbers = #tpu.dot_dimension_numbers<[1], [0], [0], [1], [0, 0, 1, 1], [], []>} : vector<2x32xf32>, vector<32x32xf32>, vector<2x32xf32> -> vector<2x32xf32>
    %c0_3 = arith.constant 0 : index
    %c0_4 = arith.constant 0 : index
    %3 = vector.load %arg1[%c0_3, %c0_4] : memref<2x32xf32, #tpu.memory_space<vmem>>, vector<2x32xf32>
    %c0_5 = arith.constant 0 : index
    %c0_6 = arith.constant 0 : index
    %4 = vector.load %arg3[%c0_5, %c0_6] : memref<32x32xf32, #tpu.memory_space<vmem>>, vector<32x32xf32>
    %cst_7 = arith.constant dense<0.000000e+00> : vector<2x32xf32>
    %5 = tpu.matmul %3, %4, %cst_7 {dimension_numbers = #tpu.dot_dimension_numbers<[1], [0], [0], [1], [0, 0, 1, 1], [], []>} : vector<2x32xf32>, vector<32x32xf32>, vector<2x32xf32> -> vector<2x32xf32>
    %6 = arith.addf %2, %5 : vector<2x32xf32>
    %c0_8 = arith.constant 0 : index
    %c0_9 = arith.constant 0 : index
    %7 = vector.load %arg4[%c0_8, %c0_9] : memref<1x32xf32, #tpu.memory_space<vmem>>, vector<1x32xf32>
    %8 = vector.broadcast %7 : vector<1x32xf32> to vector<2x32xf32>
    %9 = arith.addf %6, %8 : vector<2x32xf32>
    %cst_10 = arith.constant 0.000000e+00 : f32
    %10 = vector.broadcast %cst_10 : f32 to vector<2x32xf32>
    %11 = arith.cmpf ogt, %9, %10 : vector<2x32xf32>
    %cst_11 = arith.constant 2.000000e-01 : f32
    %12 = vector.broadcast %cst_11 : f32 to vector<2x32xf32>
    %13 = arith.mulf %12, %9 : vector<2x32xf32>
    %14 = arith.select %11, %9, %13 : vector<2x32xi1>, vector<2x32xf32>
    %c0_12 = arith.constant 0 : index
    %c0_13 = arith.constant 0 : index
    %15 = vector.load %arg5[%c0_12, %c0_13] : memref<32x32xf32, #tpu.memory_space<vmem>>, vector<32x32xf32>
    %cst_14 = arith.constant dense<0.000000e+00> : vector<2x32xf32>
    %16 = tpu.matmul %14, %15, %cst_14 {dimension_numbers = #tpu.dot_dimension_numbers<[1], [0], [0], [1], [0, 0, 1, 1], [], []>} : vector<2x32xf32>, vector<32x32xf32>, vector<2x32xf32> -> vector<2x32xf32>
    %c0_15 = arith.constant 0 : index
    %c0_16 = arith.constant 0 : index
    %17 = vector.load %arg6[%c0_15, %c0_16] : memref<1x32xf32, #tpu.memory_space<vmem>>, vector<1x32xf32>
    %18 = vector.broadcast %17 : vector<1x32xf32> to vector<2x32xf32>
    %19 = arith.addf %16, %18 : vector<2x32xf32>
    %cst_17 = arith.constant 0.000000e+00 : f32
    %20 = vector.broadcast %cst_17 : f32 to vector<2x32xf32>
    %21 = arith.cmpf ogt, %19, %20 : vector<2x32xf32>
    %cst_18 = arith.constant 2.000000e-01 : f32
    %22 = vector.broadcast %cst_18 : f32 to vector<2x32xf32>
    %23 = arith.mulf %22, %19 : vector<2x32xf32>
    %24 = arith.select %21, %19, %23 : vector<2x32xi1>, vector<2x32xf32>
    %c0_19 = arith.constant 0 : index
    %c0_20 = arith.constant 0 : index
    %25 = vector.load %arg7[%c0_19, %c0_20] : memref<32x32xf32, #tpu.memory_space<vmem>>, vector<32x32xf32>
    %cst_21 = arith.constant dense<0.000000e+00> : vector<2x32xf32>
    %26 = tpu.matmul %24, %25, %cst_21 {dimension_numbers = #tpu.dot_dimension_numbers<[1], [0], [0], [1], [0, 0, 1, 1], [], []>} : vector<2x32xf32>, vector<32x32xf32>, vector<2x32xf32> -> vector<2x32xf32>
    %c0_22 = arith.constant 0 : index
    %c0_23 = arith.constant 0 : index
    %27 = vector.load %arg8[%c0_22, %c0_23] : memref<1x32xf32, #tpu.memory_space<vmem>>, vector<1x32xf32>
    %28 = vector.broadcast %27 : vector<1x32xf32> to vector<2x32xf32>
    %29 = arith.addf %26, %28 : vector<2x32xf32>
    %c0_24 = arith.constant 0 : index
    %c0_25 = arith.constant 0 : index
    %30 = vector.load %arg9[%c0_24, %c0_25] : memref<2x32xf32, #tpu.memory_space<vmem>>, vector<2x32xf32>
    tpu.vector_store %arg9[%c0_24, %c0_25], %29 {strides = array<i32>} : memref<2x32xf32, #tpu.memory_space<vmem>>, vector<2x32xf32>,
    return
  }
}

module attributes {stable_mosaic.version = 11 : i64} {
  func.func @_vertex_kernel(%arg0: i32, %arg1: i32, %arg2: memref<1x32x1024xbf16, #tpu.memory_space<vmem>>, %arg3: memref<1x32x1xf32, #tpu.memory_space<vmem>>, %arg4: memref<256x32xbf16, #tpu.memory_space<vmem>>, %arg5: memref<224x1xf32, #tpu.memory_space<vmem>>, %arg6: memref<3x192xbf16, #tpu.memory_space<vmem>>, %arg7: memref<3x1xf32, #tpu.memory_space<vmem>>, %arg8: memref<1x3x1024xf32, #tpu.memory_space<vmem>>) attributes {dimension_semantics = [#tpu.dimension_semantics<parallel>, #tpu.dimension_semantics<parallel>], iteration_bounds = array<i64: 2, 1>, scalar_prefetch = 0 : i64, scratch_operands = 0 : i64, tpu.core_type = #tpu.core_type<tc>, window_params = [{transform_indices = @transform_0, window_bounds = array<i64: 1, 32, 1024>}, {transform_indices = @transform_1, window_bounds = array<i64: 1, 32, 1>}, {pipeline_mode = #tpu.pipeline_mode<synchronous>, transform_indices = @transform_2, window_bounds = array<i64: 256, 32>}, {pipeline_mode = #tpu.pipeline_mode<synchronous>, transform_indices = @transform_3, window_bounds = array<i64: 224, 1>}, {pipeline_mode = #tpu.pipeline_mode<synchronous>, transform_indices = @transform_4, window_bounds = array<i64: 3, 192>}, {pipeline_mode = #tpu.pipeline_mode<synchronous>, transform_indices = @transform_5, window_bounds = array<i64: 3, 1>}, {transform_indices = @transform_6, window_bounds = array<i64: 1, 3, 1024>}]} {
    %c0 = arith.constant 0 : index
    %c0_0 = arith.constant 0 : index
    %c0_1 = arith.constant 0 : index
    %0 = vector.load %arg3[%c0, %c0_0, %c0_1] : memref<1x32x1xf32, #tpu.memory_space<vmem>>, vector<1x32x1xf32>
    %1 = vector.shape_cast %0 : vector<1x32x1xf32> to vector<32x1xf32>
    %c0_2 = arith.constant 0 : index
    %c0_3 = arith.constant 0 : index
    %2 = vector.load %arg4[%c0_2, %c0_3] : memref<256x32xbf16, #tpu.memory_space<vmem>>, vector<32x32xbf16>
    %c32 = arith.constant 32 : index
    %c0_4 = arith.constant 0 : index
    %3 = vector.load %arg4[%c32, %c0_4] : memref<256x32xbf16, #tpu.memory_space<vmem>>, vector<32x32xbf16>
    %c64 = arith.constant 64 : index
    %c0_5 = arith.constant 0 : index
    %4 = vector.load %arg4[%c64, %c0_5] : memref<256x32xbf16, #tpu.memory_space<vmem>>, vector<192x32xbf16>
    %c0_6 = arith.constant 0 : index
    %c0_7 = arith.constant 0 : index
    %5 = vector.load %arg5[%c0_6, %c0_7] : memref<224x1xf32, #tpu.memory_space<vmem>>, vector<32x1xf32>
    %c32_8 = arith.constant 32 : index
    %c0_9 = arith.constant 0 : index
    %6 = vector.load %arg5[%c32_8, %c0_9] : memref<224x1xf32, #tpu.memory_space<vmem>>, vector<192x1xf32>
    %c0_10 = arith.constant 0 : index
    %c0_11 = arith.constant 0 : index
    %7 = vector.load %arg6[%c0_10, %c0_11] : memref<3x192xbf16, #tpu.memory_space<vmem>>, vector<3x192xbf16>
    %c0_12 = arith.constant 0 : index
    %c0_13 = arith.constant 0 : index
    %8 = vector.load %arg7[%c0_12, %c0_13] : memref<3x1xf32, #tpu.memory_space<vmem>>, vector<3x1xf32>
    %c0_14 = arith.constant 0 : index
    %c0_15 = arith.constant 0 : index
    %c0_16 = arith.constant 0 : index
    %9 = vector.load %arg2[%c0_14, %c0_15, %c0_16] : memref<1x32x1024xbf16, #tpu.memory_space<vmem>>, vector<1x32x512xbf16>
    %10 = vector.shape_cast %9 : vector<1x32x512xbf16> to vector<32x512xbf16>
    %cst = arith.constant dense<0.000000e+00> : vector<32x512xf32>
    %11 = tpu.matmul %2, %10, %cst {dimension_numbers = #tpu.dot_dimension_numbers<[1], [0], [0], [1], [0, 0, 1, 1], [], []>} : vector<32x32xbf16>, vector<32x512xbf16>, vector<32x512xf32> -> vector<32x512xf32>
    %12 = vector.broadcast %1 : vector<32x1xf32> to vector<32x512xf32>
    %13 = arith.addf %11, %12 : vector<32x512xf32>
    %cst_17 = arith.constant 0.000000e+00 : f32
    %14 = vector.broadcast %cst_17 : f32 to vector<32x512xf32>
    %15 = arith.maximumf %13, %14 : vector<32x512xf32>
    %16 = arith.truncf %15 : vector<32x512xf32> to vector<32x512xbf16>
    %cst_18 = arith.constant dense<0.000000e+00> : vector<32x512xf32>
    %17 = tpu.matmul %3, %16, %cst_18 {dimension_numbers = #tpu.dot_dimension_numbers<[1], [0], [0], [1], [0, 0, 1, 1], [], []>} : vector<32x32xbf16>, vector<32x512xbf16>, vector<32x512xf32> -> vector<32x512xf32>
    %18 = vector.broadcast %5 : vector<32x1xf32> to vector<32x512xf32>
    %19 = arith.addf %17, %18 : vector<32x512xf32>
    %cst_19 = arith.constant 0.000000e+00 : f32
    %20 = vector.broadcast %cst_19 : f32 to vector<32x512xf32>
    %21 = arith.maximumf %19, %20 : vector<32x512xf32>
    %22 = arith.truncf %21 : vector<32x512xf32> to vector<32x512xbf16>
    %cst_20 = arith.constant dense<0.000000e+00> : vector<192x512xf32>
    %23 = tpu.matmul %4, %22, %cst_20 {dimension_numbers = #tpu.dot_dimension_numbers<[1], [0], [0], [1], [0, 0, 1, 1], [], []>} : vector<192x32xbf16>, vector<32x512xbf16>, vector<192x512xf32> -> vector<192x512xf32>
    %24 = vector.broadcast %6 : vector<192x1xf32> to vector<192x512xf32>
    %25 = arith.addf %23, %24 : vector<192x512xf32>
    %cst_21 = arith.constant 0.000000e+00 : f32
    %26 = vector.broadcast %cst_21 : f32 to vector<192x512xf32>
    %27 = arith.maximumf %25, %26 : vector<192x512xf32>
    %28 = arith.truncf %27 : vector<192x512xf32> to vector<192x512xbf16>
    %cst_22 = arith.constant dense<0.000000e+00> : vector<3x512xf32>
    %29 = tpu.matmul %7, %28, %cst_22 {dimension_numbers = #tpu.dot_dimension_numbers<[1], [0], [0], [1], [0, 0, 1, 1], [], []>} : vector<3x192xbf16>, vector<192x512xbf16>, vector<3x512xf32> -> vector<3x512xf32>
    %30 = vector.broadcast %8 : vector<3x1xf32> to vector<3x512xf32>
    %31 = arith.addf %29, %30 : vector<3x512xf32>
    %c0_23 = arith.constant 0 : index
    %c0_24 = arith.constant 0 : index
    %c0_25 = arith.constant 0 : index
    %32 = vector.load %arg8[%c0_23, %c0_24, %c0_25] : memref<1x3x1024xf32, #tpu.memory_space<vmem>>, vector<1x3x512xf32>
    %33 = vector.shape_cast %32 : vector<1x3x512xf32> to vector<3x512xf32>
    %34 = vector.shape_cast %31 : vector<3x512xf32> to vector<1x3x512xf32>
    tpu.vector_store %arg8[%c0_23, %c0_24, %c0_25], %34 {strides = array<i32>} : memref<1x3x1024xf32, #tpu.memory_space<vmem>>, vector<1x3x512xf32>,
    %c0_26 = arith.constant 0 : index
    %c0_27 = arith.constant 0 : index
    %c512 = arith.constant 512 : index
    %35 = vector.load %arg2[%c0_26, %c0_27, %c512] : memref<1x32x1024xbf16, #tpu.memory_space<vmem>>, vector<1x32x512xbf16>
    %36 = vector.shape_cast %35 : vector<1x32x512xbf16> to vector<32x512xbf16>
    %cst_28 = arith.constant dense<0.000000e+00> : vector<32x512xf32>
    %37 = tpu.matmul %2, %36, %cst_28 {dimension_numbers = #tpu.dot_dimension_numbers<[1], [0], [0], [1], [0, 0, 1, 1], [], []>} : vector<32x32xbf16>, vector<32x512xbf16>, vector<32x512xf32> -> vector<32x512xf32>
    %38 = vector.broadcast %1 : vector<32x1xf32> to vector<32x512xf32>
    %39 = arith.addf %37, %38 : vector<32x512xf32>
    %cst_29 = arith.constant 0.000000e+00 : f32
    %40 = vector.broadcast %cst_29 : f32 to vector<32x512xf32>
    %41 = arith.maximumf %39, %40 : vector<32x512xf32>
    %42 = arith.truncf %41 : vector<32x512xf32> to vector<32x512xbf16>
    %cst_30 = arith.constant dense<0.000000e+00> : vector<32x512xf32>
    %43 = tpu.matmul %3, %42, %cst_30 {dimension_numbers = #tpu.dot_dimension_numbers<[1], [0], [0], [1], [0, 0, 1, 1], [], []>} : vector<32x32xbf16>, vector<32x512xbf16>, vector<32x512xf32> -> vector<32x512xf32>
    %44 = vector.broadcast %5 : vector<32x1xf32> to vector<32x512xf32>
    %45 = arith.addf %43, %44 : vector<32x512xf32>
    %cst_31 = arith.constant 0.000000e+00 : f32
    %46 = vector.broadcast %cst_31 : f32 to vector<32x512xf32>
    %47 = arith.maximumf %45, %46 : vector<32x512xf32>
    %48 = arith.truncf %47 : vector<32x512xf32> to vector<32x512xbf16>
    %cst_32 = arith.constant dense<0.000000e+00> : vector<192x512xf32>
    %49 = tpu.matmul %4, %48, %cst_32 {dimension_numbers = #tpu.dot_dimension_numbers<[1], [0], [0], [1], [0, 0, 1, 1], [], []>} : vector<192x32xbf16>, vector<32x512xbf16>, vector<192x512xf32> -> vector<192x512xf32>
    %50 = vector.broadcast %6 : vector<192x1xf32> to vector<192x512xf32>
    %51 = arith.addf %49, %50 : vector<192x512xf32>
    %cst_33 = arith.constant 0.000000e+00 : f32
    %52 = vector.broadcast %cst_33 : f32 to vector<192x512xf32>
    %53 = arith.maximumf %51, %52 : vector<192x512xf32>
    %54 = arith.truncf %53 : vector<192x512xf32> to vector<192x512xbf16>
    %cst_34 = arith.constant dense<0.000000e+00> : vector<3x512xf32>
    %55 = tpu.matmul %7, %54, %cst_34 {dimension_numbers = #tpu.dot_dimension_numbers<[1], [0], [0], [1], [0, 0, 1, 1], [], []>} : vector<3x192xbf16>, vector<192x512xbf16>, vector<3x512xf32> -> vector<3x512xf32>
    %56 = vector.broadcast %8 : vector<3x1xf32> to vector<3x512xf32>
    %57 = arith.addf %55, %56 : vector<3x512xf32>
    %c0_35 = arith.constant 0 : index
    %c0_36 = arith.constant 0 : index
    %c512_37 = arith.constant 512 : index
    %58 = vector.load %arg8[%c0_35, %c0_36, %c512_37] : memref<1x3x1024xf32, #tpu.memory_space<vmem>>, vector<1x3x512xf32>
    %59 = vector.shape_cast %58 : vector<1x3x512xf32> to vector<3x512xf32>
    %60 = vector.shape_cast %57 : vector<3x512xf32> to vector<1x3x512xf32>
    tpu.vector_store %arg8[%c0_35, %c0_36, %c512_37], %60 {strides = array<i32>} : memref<1x3x1024xf32, #tpu.memory_space<vmem>>, vector<1x3x512xf32>,
    return
  }
  func.func @transform_0(%arg0: i32, %arg1: i32) -> (i32, i32, i32) {
    %c0_i32 = arith.constant 0 : i32
    %c0_i32_0 = arith.constant 0 : i32
    return %arg0, %c0_i32, %arg1 : i32, i32, i32
  }
  func.func @transform_1(%arg0: i32, %arg1: i32) -> (i32, i32, i32) {
    %c0_i32 = arith.constant 0 : i32
    %c0_i32_0 = arith.constant 0 : i32
    %c0_i32_1 = arith.constant 0 : i32
    return %arg0, %c0_i32, %c0_i32_0 : i32, i32, i32
  }
  func.func @transform_2(%arg0: i32, %arg1: i32) -> (i32, i32) {
    %c0_i32 = arith.constant 0 : i32
    %c0_i32_0 = arith.constant 0 : i32
    %c0_i32_1 = arith.constant 0 : i32
    return %c0_i32, %c0_i32_0 : i32, i32
  }
  func.func @transform_3(%arg0: i32, %arg1: i32) -> (i32, i32) {
    %c0_i32 = arith.constant 0 : i32
    %c0_i32_0 = arith.constant 0 : i32
    %c0_i32_1 = arith.constant 0 : i32
    return %c0_i32, %c0_i32_0 : i32, i32
  }
  func.func @transform_4(%arg0: i32, %arg1: i32) -> (i32, i32) {
    %c0_i32 = arith.constant 0 : i32
    %c0_i32_0 = arith.constant 0 : i32
    %c0_i32_1 = arith.constant 0 : i32
    return %c0_i32, %c0_i32_0 : i32, i32
  }
  func.func @transform_5(%arg0: i32, %arg1: i32) -> (i32, i32) {
    %c0_i32 = arith.constant 0 : i32
    %c0_i32_0 = arith.constant 0 : i32
    %c0_i32_1 = arith.constant 0 : i32
    return %c0_i32, %c0_i32_0 : i32, i32
  }
  func.func @transform_6(%arg0: i32, %arg1: i32) -> (i32, i32, i32) {
    %c0_i32 = arith.constant 0 : i32
    %c0_i32_0 = arith.constant 0 : i32
    return %arg0, %c0_i32, %arg1 : i32, i32, i32
  }
}

</mosaic_0001>

<bundles_post_ra>
// kernel: mesh_displacement_forward.2
= control target key start
LH: loop header
LB: loop body
LE: loop exit
PB: predicated region body
PF: predicated region fallthrough
CT: control target
= control target key end

     0   :  { %v450_v0 = vmov 0.0   ;;  %vm42_vm0 = vcmask 261120   ;;  %vm451_vm1 = vmmov 0   ;;  %vm371_vm4 = vcmask 254976   ;;  %s592_s3 = inlined_call_operand.vmem [shape: f32[32,32], index: 3, kind: input, shape index: {}]   ;;  %s593_s2 = inlined_call_operand.vmem [shape: f32[32,32], index: 2, kind: input, shape index: {}]   ;;  %s594_s1 = inlined_call_operand.vmem [shape: f32[2,32], index: 1, kind: input, shape index: {}]   ;;  %s595_s0 = inlined_call_operand.vmem [shape: f32[2,32], index: 0, kind: input, shape index: {}]   ;;  %s596_s5 = inlined_call_operand.vmem [shape: f32[32,32], index: 5, kind: input, shape index: {}]   ;;  %s597_s7 = inlined_call_operand.vmem [shape: f32[32,32], index: 7, kind: input, shape index: {}]   ;;  %s598_s4 = inlined_call_operand.vmem [shape: f32[1,32], index: 4, kind: input, shape index: {}]   ;;  %s599_s6 = inlined_call_operand.vmem [shape: f32[1,32], index: 6, kind: input, shape index: {}]   ;;  %s600_s8 = inlined_call_operand.vmem [shape: f32[1,32], index: 8, kind: input, shape index: {}]   ;;  %s601_s9 = inlined_call_operand.vmem [shape: f32[2,32], index: 9, kind: output, shape index: {}]  }
   0x1   :  { %404 = vmatprep.subr.mxu0 %v450_v0  ;;  %415 = vmatprep.subr.mxu1 %v450_v0  ;;  %v41_v1 = vld [vmem:[%s592_s3 + $0x18] sm:$0xff]  ;;  %v40_v3 = vld [vmem:[%s592_s3 + $0x10] sm:$0xff]  ;;  %v39_v5 = vld [vmem:[%s592_s3 + $0x8] sm:$0xff] }
   0x2   :  { %v36_v2 = vld [vmem:[%s593_s2 + $0x18] sm:$0xff]  ;;  %405 = vmatpush3.msra.mxu0 %v41_v1  ;;  %v35_v4 = vld [vmem:[%s593_s2 + $0x10] sm:$0xff]  ;;  %v34_v6 = vld [vmem:[%s593_s2 + $0x8] sm:$0xff]  ;;  %412 = vmatprep.mubr.msk.f32.mxu0 %vm451_vm1, %v450_v0 }
   0x3   :  { %416 = vmatpush3.msra.mxu1 %v36_v2  ;;  %406 = vmatprep.subr.mxu0 %v450_v0  ;;  %v38_v7 = vld [vmem:[%s592_s3] sm:$0xff]  ;;  %v203_v11 = vld [vmem:[%s596_s5 + $0x18] sm:$0xff]  ;;  %v202_v12 = vld [vmem:[%s596_s5 + $0x10] sm:$0xff] }
   0x4   :  { %417 = vmatprep.subr.mxu1 %v450_v0  ;;  %407 = vmatpush3.msra.mxu0 %v40_v3  ;;  %v33_v8 = vld [vmem:[%s593_s2] sm:$0xff]  ;;  %v201_v13 = vld [vmem:[%s596_s5 + $0x8] sm:$0xff]  ;;  %v290_v15 = vld [vmem:[%s597_s7 + $0x18] sm:$0xff] }
   0x5   :  { %418 = vmatpush3.msra.mxu1 %v35_v4  ;;  %408 = vmatprep.subr.mxu0 %v450_v0  ;;  %v37_v9 = vld [vmem:[%s594_s1] sm:$0x3]  ;;  %v289_v25 = vld [vmem:[%s597_s7 + $0x10] sm:$0xff]  ;;  %v288_v26 = vld [vmem:[%s597_s7 + $0x8] sm:$0xff] }
   0x6   :  { %419 = vmatprep.subr.mxu1 %v450_v0  ;;  %409 = vmatpush3.msra.mxu0 %v39_v5  ;;  %v32_v10 = vld [vmem:[%s595_s0] sm:$0x3] }
   0x7   :  { %420 = vmatpush3.msra.mxu1 %v34_v6  ;;  %410 = vmatprep.subr.mxu0 %v450_v0  ;;  %v200_v14 = vld [vmem:[%s596_s5] sm:$0xff] }
   0x8   :  { %421 = vmatprep.subr.mxu1 %v450_v0  ;;  %411 = vmatpush3.msra.mxu0 %v38_v7  ;;  %v379_v18 = vld [vmem:[%s598_s4] ss:$0 sm:$0xff] }
   0x9   :  { %422 = vmatpush3.msra.mxu1 %v33_v8  ;;  %423 = vmatprep.mubr.msk.f32.mxu1 %vm451_vm1, %v450_v0  ;;  %v287_v27 = vld [vmem:[%s597_s7] sm:$0xff] }
   0xa   :  { %413 = vmatmul.mubr.msk.f32.vlgmr.msra.gmra.mxu0 %vm42_vm0, %v37_v9  ;;  %424 = vmatmul.mubr.msk.f32.vlgmr.msra.gmra.mxu1 %vm42_vm0, %v32_v10  ;;  %v380_v28 = vld [vmem:[%s599_s6] ss:$0 sm:$0xff] }
   0xb   :  { %426 = vmatprep.subr.mxu0 %v450_v0  ;;  %434 = vmatprep.mubr.msk.f32.mxu0 %vm451_vm1, %v450_v0  ;;  %v382_v34 = vld [vmem:[%s600_s8] ss:$0 sm:$0xff] }
   0xc   :  { %437 = vmatprep.subr.mxu1 %v450_v0  ;;  %445 = vmatprep.mubr.msk.f32.mxu1 %vm451_vm1, %v450_v0 }
   0xd   :  { %427 = vmatpush3.msra.mxu0 %v203_v11  ;;  %438 = vmatpush3.msra.mxu1 %v290_v15 }
   0xe   :  { %428 = vmatprep.subr.mxu0 %v450_v0  ;;  %439 = vmatprep.subr.mxu1 %v450_v0 }
   0xf   :  { %429 = vmatpush3.msra.mxu0 %v202_v12  ;;  %440 = vmatpush3.msra.mxu1 %v289_v25 }
  0x10   :  { %430 = vmatprep.subr.mxu0 %v450_v0  ;;  %441 = vmatprep.subr.mxu1 %v450_v0 }
  0x11   :  { %431 = vmatpush3.msra.mxu0 %v201_v13  ;;  %442 = vmatpush3.msra.mxu1 %v288_v26 }
  0x12   :  { %432 = vmatprep.subr.mxu0 %v450_v0  ;;  %443 = vmatprep.subr.mxu1 %v450_v0 }
  0x13   :  { %433 = vmatpush3.msra.mxu0 %v200_v14  ;;  %444 = vmatpush3.msra.mxu1 %v287_v27 }
  0xca   :  { %v112_v16 = vpop.f32.mrf.mxu0  ;;  %v185_v17 = vpop.f32.mrf.mxu1 }
  0xcb   :  { %v186_v19 = vadd.f32 %v185_v17, %v112_v16 }
  0xcc   :  { %v414_v20 = vpop.f32.mrf.mxu0  ;;  %v425_v21 = vpop.f32.mrf.mxu1 }
  0xcd   :  { %v196_v22 = vadd.f32 %v379_v18, %v186_v19 }
  0xcf   :  { %vm197_vm2 = vcmp.gt.f32.partialorder %v196_v22, 0.0  ;;  %v198_v23 = vmul.f32 0.2, %v196_v22 }
  0xd1   :  { %v199_v24 = vsel %vm197_vm2, %v196_v22, %v198_v23 }
  0xd2   :  { %435 = vmatmul.mubr.msk.f32.vlgmr.msra.gmra.mxu0 %vm42_vm0, %v199_v24 }
 0x192   :  { %v280_v29 = vpop.f32.mrf.mxu0 }
 0x193   :  { %v281_v30 = vadd.f32 %v380_v28, %v280_v29 }
 0x194   :  { %v436_v31 = vpop.f32.mrf.mxu0 }
 0x195   :  { %vm284_vm3 = vcmp.gt.f32.partialorder %v281_v30, 0.0  ;;  %v285_v32 = vmul.f32 0.2, %v281_v30 }
 0x197   :  { %v286_v33 = vsel %vm284_vm3, %v281_v30, %v285_v32 }
 0x198   :  { %446 = vmatmul.mubr.msk.f32.vlgmr.msra.gmra.mxu1 %vm42_vm0, %v286_v33 }
 0x258   :  { %v367_v35 = vpop.f32.mrf.mxu1 }
 0x259   :  { %v368_v36 = vadd.f32 %v382_v34, %v367_v35 }
 0x25a   :  { %v447_v37 = vpop.f32.mrf.mxu1 }
 0x25b   :  { %372 = vst.msk [vmem:[%s601_s9] sm:$0x3] %vm371_vm4, %v368_v36 }

// kernel: mesh_displacement_forward.3
= control target key start
LH: loop header
LB: loop body
LE: loop exit
PB: predicated region body
PF: predicated region fallthrough
CT: control target
= control target key end

     0   :  { %s2722_s21 = smov 0   ;;  %s2724_s22 = smov 0   ;;  %s3903_s0 = inlined_call_operand.vmem [shape: bf16[2,32,1024], index: 0, kind: input, shape index: {}]   ;;  %s3904_s1 = inlined_call_operand.vmem [shape: f32[2,32,1], index: 1, kind: input, shape index: {}]   ;;  %s3905_s2 = inlined_call_operand.vmem [shape: bf16[256,32], index: 2, kind: input, shape index: {}]   ;;  %s3906_s3 = inlined_call_operand.vmem [shape: f32[224,1], index: 3, kind: input, shape index: {}]   ;;  %s3907_s4 = inlined_call_operand.vmem [shape: bf16[3,192], index: 4, kind: input, shape index: {}]   ;;  %s3908_s5 = inlined_call_operand.vmem [shape: f32[3,1], index: 5, kind: input, shape index: {}]   ;;  %s3909_s6 = inlined_call_operand.vmem [shape: f32[2,3,1024], index: 6, kind: output, shape index: {}]  }
   0x1   :  { %s2726_s23 = smov 0  }
   0x2 LB: > { %s28_s24 = sadd.s32 1, %s2680_s22  ;;  %p2489_p0 = scmp.ge.s32.totalorder %s2684_s23, 1  ;;  %s2684_s23 = sphi %s2726_s23, %s16_s23   ;;  %s2680_s22 = sphi %s2724_s22, %s4116_s22   ;;  %s2676_s21 = sphi %s2722_s21, %s4115_s21  }
   0x3   : > { %p30_p1 = scmp.ge.s32.totalorder %s28_s24, 2  ;;  %p243_p2 = scmp.lt.s32.totalorder %s2684_s23, 3 }
   0x5   : > { %s4118_s24 = smov (%p30_p1, %s28_s24), 0  ;;  %p244_p3 = pnand %p2489_p0, %p243_p2 }
   0x7   : > { %247 = sbr.rel (%p244_p3) target bundleno = 1739 (0x6cb), region = 44 }
   0xc   : > { %p287_p4 = scmp.lt.s32.totalorder %s2676_s21, 1  ;;  %v3910_v0 = vmov 0   ;;  %v2629_v20 = vld [vmem:[%s3905_s2] sm:$0xff]   ;;  %vm456_vm0 = vcmask 261120   ;;  %v350_v22 = vld [vmem:[%s3906_s3 + $0x10] sm:$0xff]  ;;  %v351_v23 = vld [vmem:[%s3906_s3 + $0x18] sm:$0xff] }
   0xd   : > { %495 = vmatprep.mubr.bf16.mxu0 %v3910_v0  ;;  %548 = vmatprep.mubr.bf16.mxu1 %v3910_v0  ;;  %v348_v24 = vld [vmem:[%s3906_s3] sm:$0xff]  ;;  %v2630_v25 = vld [vmem:[%s3905_s2 + $0x8] sm:$0xff]   ;;  %v366_v27 = vld [vmem:[%s3906_s3 + $0x90] sm:$0xff]  ;;  %vm1440_vm1 = vcmask 523264  }
   0xe   : > { %s4120_s21 = smov (!%p287_p4, %s2676_s21), 1  ;;  %2627 = vset.pattern.permute.xlu0 %v3910_v0  ;;  %2628 = vset.pattern.permute.xlu1 %v3910_v0  ;;  %v349_v26 = vld [vmem:[%s3906_s3 + $0x8] sm:$0xff]  ;;  %v367_v28 = vld [vmem:[%s3906_s3 + $0x98] sm:$0xff]  ;;  %v364_v29 = vld [vmem:[%s3906_s3 + $0x80] sm:$0xff] }
   0xf   : > { %s2599_s25 = sshll.u32 %s4120_s21, 7  ;;  %s2600_s26 = sshll.u32 %s4120_s21, 5  ;;  %v365_v30 = vld [vmem:[%s3906_s3 + $0x88] sm:$0xff]  ;;  %v362_v31 = vld [vmem:[%s3906_s3 + $0x70] sm:$0xff]  ;;  %v363_v32 = vld [vmem:[%s3906_s3 + $0x78] sm:$0xff] }
  0x10   : > { %s2751_s29 = scalar_lea.vmem %s3903_s0, %s2599_s25  ;;  %s300_s8 = scalar_lea.vmem %s3904_s1, %s2600_s26  ;;  %v360_v33 = vld [vmem:[%s3906_s3 + $0x60] sm:$0xff]  ;;  %v361_v34 = vld [vmem:[%s3906_s3 + $0x68] sm:$0xff]  ;;  %v358_v35 = vld [vmem:[%s3906_s3 + $0x50] sm:$0xff] }
  0x11   : > { %v382_v1 = vld [vmem:[%s2751_s29 + $0x40] sm:$0xff]  ;;  %v383_v3 = vld [vmem:[%s2751_s29 + $0x48] sm:$0xff]  ;;  %v314_v14 = vld [vmem:[%s300_s8 + $0x10] sm:$0xff]  ;;  %s3447_s16 = scalar_lea.vmem %s3909_s6, %s2600_s26 }
  0x12   : > { %v384_v2 = vld [vmem:[%s2751_s29 + $0x60] sm:$0xff]  ;;  %v385_v5 = vld [vmem:[%s2751_s29 + $0x68] sm:$0xff]  ;;  %398 = vperm.xlu0 %2627, %v314_v14   ;;  %v315_v18 = vld [vmem:[%s300_s8 + $0x18] sm:$0xff] }
  0x13   : > { %v2503_v4 = vcombine.high %v382_v1, %v384_v2  ;;  %v2502_v6 = vcombine.low %v382_v1, %v384_v2  ;;  %v378_v7 = vld [vmem:[%s2751_s29] sm:$0xff]  ;;  %v2505_v9 = vcombine.high %v383_v3, %v385_v5  ;;  %v2504_v10 = vcombine.low %v383_v3, %v385_v5  ;;  %v379_v12 = vld [vmem:[%s2751_s29 + $0x8] sm:$0xff]  ;;  %v359_v36 = vld [vmem:[%s3906_s3 + $0x58] sm:$0xff] }
  0x14   : > { %v380_v8 = vld [vmem:[%s2751_s29 + $0x20] sm:$0xff]  ;;  %v381_v13 = vld [vmem:[%s2751_s29 + $0x28] sm:$0xff]  ;;  %v354_v39 = vld [vmem:[%s3906_s3 + $0x30] sm:$0xff] }
  0x15   : > { %v2499_v11 = vcombine.high %v378_v7, %v380_v8  ;;  %475 = vmatprep.subr.bf16.mxu0 %v2503_v4  ;;  %v2501_v15 = vcombine.high %v379_v12, %v381_v13  ;;  %v312_v16 = vld [vmem:[%s300_s8] sm:$0xff]  ;;  %528 = vmatprep.subr.bf16.mxu1 %v2505_v9  ;;  %v2498_v17 = vcombine.low %v378_v7, %v380_v8  ;;  %v313_v21 = vld [vmem:[%s300_s8 + $0x8] sm:$0xff]  ;;  %v355_v40 = vld [vmem:[%s3906_s3 + $0x38] sm:$0xff] }
  0x16   : > { %476 = vmatpush1.bf16.msra.mxu0 %v2502_v6  ;;  %529 = vmatpush1.bf16.msra.mxu1 %v2504_v10  ;;  %v2500_v19 = vcombine.low %v379_v12, %v381_v13  ;;  %v356_v37 = vld [vmem:[%s3906_s3 + $0x40] sm:$0xff]  ;;  %v357_v38 = vld [vmem:[%s3906_s3 + $0x48] sm:$0xff]  ;;  %v374_v43 = vld [vmem:[%s3906_s3 + $0xd0] sm:$0xff] }
  0x17   : > { %477 = vmatprep.subr.bf16.mxu0 %v2499_v11  ;;  %530 = vmatprep.subr.bf16.mxu1 %v2501_v15  ;;  %v352_v41 = vld [vmem:[%s3906_s3 + $0x20] sm:$0xff]  ;;  %v353_v42 = vld [vmem:[%s3906_s3 + $0x28] sm:$0xff]  ;;  %v375_v44 = vld [vmem:[%s3906_s3 + $0xd8] sm:$0xff] }
  0x18   : > { %388 = vperm.xlu1 %2628, %v312_v16   ;;  %403 = vperm.xlu0 %2627, %v315_v18   ;;  %v372_v45 = vld [vmem:[%s3906_s3 + $0xc0] sm:$0xff]  ;;  %v373_v46 = vld [vmem:[%s3906_s3 + $0xc8] sm:$0xff]  ;;  %v370_v47 = vld [vmem:[%s3906_s3 + $0xb0] sm:$0xff] }
  0x19   : > { %v371_v48 = vld [vmem:[%s3906_s3 + $0xb8] sm:$0xff]  ;;  %v368_v49 = vld [vmem:[%s3906_s3 + $0xa0] sm:$0xff]  ;;  %v369_v50 = vld [vmem:[%s3906_s3 + $0xa8] sm:$0xff] }
  0x1a   : > { %478 = vmatpush1.bf16.msra.mxu0 %v2498_v17  ;;  %531 = vmatpush1.bf16.msra.mxu1 %v2500_v19  ;;  %v377_v51 = vld [vmem:[%s3908_s5] sm:$0x7] }
  0x1c   : > { %393 = vperm.xlu1 %2628, %v313_v21   ;;  %605 = vperm.xlu0 %2627, %v350_v22  }
  0x1d   : > { %2506 = vmatmul.mubr.msk.bf16.vlgmr.msra.gmra.mxu0 %vm456_vm0, %v2629_v20  ;;  %2508 = vmatmul.mubr.msk.bf16.vlgmr.msra.gmra.mxu1 %vm456_vm0, %v2629_v20 }
  0x1e   : > { %505 = vmatprep.mubr.bf16.mxu0 %v3910_v0  ;;  %558 = vmatprep.mubr.bf16.mxu1 %v3910_v0 }
  0x20   : > { %610 = vperm.xlu1 %2628, %v351_v23   ;;  %595 = vperm.xlu0 %2627, %v348_v24  }
  0x24   : > { %600 = vperm.xlu1 %2628, %v349_v26   ;;  %831 = vperm.xlu0 %2627, %v366_v27  }
  0x25   : > { %2507 = vmatmul.mubr.msk.bf16.gmra.mxu0 %vm456_vm0, %v2630_v25  ;;  %2509 = vmatmul.mubr.msk.bf16.gmra.mxu1 %vm456_vm0, %v2630_v25 }
  0x26   : > { %661 = vmatprep.mubr.bf16.mxu0 %v3910_v0  ;;  %714 = vmatprep.mubr.bf16.mxu1 %v3910_v0 }
  0x28   : > { %836 = vperm.xlu1 %2628, %v367_v28   ;;  %821 = vperm.xlu0 %2627, %v364_v29  }
  0x2c   : > { %826 = vperm.xlu1 %2628, %v365_v30   ;;  %811 = vperm.xlu0 %2627, %v362_v31  }
  0x30   : > { %816 = vperm.xlu1 %2628, %v363_v32   ;;  %801 = vperm.xlu0 %2627, %v360_v33  }
  0x34   : > { %806 = vperm.xlu1 %2628, %v361_v34   ;;  %791 = vperm.xlu0 %2627, %v358_v35  }
  0x38   : > { %796 = vperm.xlu1 %2628, %v359_v36   ;;  %781 = vperm.xlu0 %2627, %v356_v37  }
  0x3c   : > { %786 = vperm.xlu1 %2628, %v357_v38   ;;  %771 = vperm.xlu0 %2627, %v354_v39  }
  0x40   : > { %776 = vperm.xlu1 %2628, %v355_v40   ;;  %761 = vperm.xlu0 %2627, %v352_v41  }
  0x44   : > { %766 = vperm.xlu1 %2628, %v353_v42   ;;  %871 = vperm.xlu0 %2627, %v374_v43  }
  0x48   : > { %876 = vperm.xlu1 %2628, %v375_v44   ;;  %861 = vperm.xlu0 %2627, %v372_v45  }
  0x4c   : > { %866 = vperm.xlu1 %2628, %v373_v46   ;;  %851 = vperm.xlu0 %2627, %v370_v47  }
  0x50   : > { %856 = vperm.xlu1 %2628, %v371_v48   ;;  %841 = vperm.xlu0 %2627, %v368_v49   ;;  %v2631_v49 = vld [vmem:[%s3905_s2 + $0x10] sm:$0xff]  }
  0x54   : > { %846 = vperm.xlu1 %2628, %v369_v50   ;;  %1427 = vperm.xlu0 %2627, %v377_v51   ;;  %v2632_v50 = vld [vmem:[%s3905_s2 + $0x18] sm:$0xff]  }
  0x8d   : > { %v2867_v57 = vpop.permute.xlu0 %398 }
  0x8e   : > { %3975 = vst [vmem:[#allocation2_spill] sm:$0xff] %v2867_v57 }
  0x93   : > { %v2869_v59 = vpop.permute.xlu1 %388  ;;  %v2871_v2 = vpop.permute.xlu0 %403 }
  0x94   : > { %3976 = vst [vmem:[#allocation3_spill] sm:$0xff] %v2869_v59  ;;  %3977 = vst [vmem:[#allocation4_spill] sm:$0xff] %v2871_v2 }
  0x97   : > { %v2873_v4 = vpop.permute.xlu1 %393 }
  0x98   : > { %3978 = vst [vmem:[#allocation5_spill] sm:$0xff] %v2873_v4 }
  0xdd   : > { %v497_v52 = vpop.f32.mrf.mxu0  ;;  %v550_v53 = vpop.f32.mrf.mxu1 }
  0xde   : > { %v498_v6 = vadd.f32 %v497_v52, %v2869_v59  ;;  %v551_v33 = vadd.f32 %v550_v53, %v2869_v59 }
  0xdf   : > { %v499_v54 = vpop.f32.mrf.mxu0  ;;  %v552_v55 = vpop.f32.mrf.mxu1 }
  0xe0   : > { %v500_v16 = vadd.f32 %v499_v54, %v2869_v59  ;;  %v553_v17 = vadd.f32 %v552_v55, %v2869_v59  ;;  %v569_v44 = vmax.f32 %v498_v6, 0.0  ;;  %v571_v46 = vmax.f32 %v551_v33, 0.0 }
  0xe1   : > { %v501_v56 = vpop.f32.mrf.mxu0  ;;  %v554_v58 = vpop.f32.mrf.mxu1 }
  0xe2   : > { %v502_v21 = vadd.f32 %v501_v56, %v2873_v4  ;;  %v555_v22 = vadd.f32 %v554_v58, %v2873_v4  ;;  %v570_v34 = vmax.f32 %v500_v16, 0.0  ;;  %v572_v37 = vmax.f32 %v553_v17, 0.0  ;;  %v2905_v56 = vpop.permute.xlu0 %605 }
  0xe3   : > { %v503_v60 = vpop.f32.mrf.mxu0  ;;  %v556_v61 = vpop.f32.mrf.mxu1  ;;  %3979 = vst [vmem:[#allocation6_spill] sm:$0xff] %v2905_v56 }
  0xe4   : > { %v504_v7 = vadd.f32 %v503_v60, %v2873_v4  ;;  %v557_v11 = vadd.f32 %v556_v61, %v2873_v4  ;;  %v573_v38 = vmax.f32 %v502_v21, 0.0  ;;  %v575_v41 = vmax.f32 %v555_v22, 0.0  ;;  %v2907_v60 = vpop.permute.xlu1 %610 }
  0xe5   : > { %v507_v62 = vpop.f32.mrf.mxu0  ;;  %v560_v63 = vpop.f32.mrf.mxu1  ;;  %3980 = vst [vmem:[#allocation7_spill] sm:$0xff] %v2907_v60 }
  0xe6   : > { %v508_v12 = vadd.f32 %v507_v62, %v2867_v57  ;;  %v561_v18 = vadd.f32 %v560_v63, %v2867_v57  ;;  %v574_v25 = vmax.f32 %v504_v7, 0.0  ;;  %v576_v29 = vmax.f32 %v557_v11, 0.0 }
  0xe7   : > { %v509_v1 = vpop.f32.mrf.mxu0  ;;  %v562_v3 = vpop.f32.mrf.mxu1  ;;  %v585_v47 = vpack.c.bf16 %v573_v38, %v569_v44  ;;  %v587_v48 = vpack.c.bf16 %v575_v41, %v571_v46 }
  0xe8   : > { %v510_v8 = vadd.f32 %v509_v1, %v2867_v57  ;;  %v563_v13 = vadd.f32 %v562_v3, %v2867_v57  ;;  %v577_v30 = vmax.f32 %v508_v12, 0.0  ;;  %v579_v35 = vmax.f32 %v561_v18, 0.0  ;;  %v2911_v7 = vpop.permute.xlu1 %600 }
  0xe9   : > { %v511_v5 = vpop.f32.mrf.mxu0  ;;  %v564_v10 = vpop.f32.mrf.mxu1  ;;  %v586_v43 = vpack.c.bf16 %v574_v25, %v570_v34  ;;  %v588_v45 = vpack.c.bf16 %v576_v29, %v572_v37  ;;  %3982 = vst [vmem:[#allocation9_spill] sm:$0xff] %v2911_v7 }
  0xea   : > { %v512_v9 = vadd.f32 %v511_v5, %v2871_v2  ;;  %v565_v14 = vadd.f32 %v564_v10, %v2871_v2  ;;  %v578_v26 = vmax.f32 %v510_v8, 0.0  ;;  %v580_v31 = vmax.f32 %v563_v13, 0.0  ;;  %v2909_v5 = vpop.permute.xlu0 %595 }
  0xeb   : > { %v513_v15 = vpop.f32.mrf.mxu0  ;;  %v566_v20 = vpop.f32.mrf.mxu1  ;;  %3981 = vst [vmem:[#allocation8_spill] sm:$0xff] %v2909_v5 }
  0xec   : > { %v514_v19 = vadd.f32 %v513_v15, %v2871_v2  ;;  %v581_v23 = vmax.f32 %v512_v9, 0.0  ;;  %v567_v24 = vadd.f32 %v566_v20, %v2871_v2  ;;  %v583_v27 = vmax.f32 %v565_v14, 0.0 }
  0xee   : > { %v582_v28 = vmax.f32 %v514_v19, 0.0  ;;  %v584_v32 = vmax.f32 %v567_v24, 0.0  ;;  %v589_v39 = vpack.c.bf16 %v581_v23, %v577_v30  ;;  %v591_v42 = vpack.c.bf16 %v583_v27, %v579_v35 }
  0xf0   : > { %v590_v36 = vpack.c.bf16 %v582_v28, %v578_v26  ;;  %v592_v40 = vpack.c.bf16 %v584_v32, %v580_v31 }
  0xf2   : > { %641 = vmatprep.subr.bf16.mxu0 %v590_v36  ;;  %694 = vmatprep.subr.bf16.mxu1 %v592_v40 }
  0xf3   : > { %642 = vmatpush1.bf16.msra.mxu0 %v589_v39  ;;  %695 = vmatpush1.bf16.msra.mxu1 %v591_v42 }
  0xf4   : > { %643 = vmatprep.subr.bf16.mxu0 %v586_v43  ;;  %696 = vmatprep.subr.bf16.mxu1 %v588_v45 }
  0xf7   : > { %644 = vmatpush1.bf16.msra.mxu0 %v585_v47  ;;  %697 = vmatpush1.bf16.msra.mxu1 %v587_v48 }
  0xfa   : > { %2512 = vmatmul.mubr.msk.bf16.vlgmr.msra.gmra.mxu0 %vm456_vm0, %v2631_v49  ;;  %2514 = vmatmul.mubr.msk.bf16.vlgmr.msra.gmra.mxu1 %vm456_vm0, %v2631_v49 }
  0xfb   : > { %671 = vmatprep.mubr.bf16.mxu0 %v3910_v0  ;;  %724 = vmatprep.mubr.bf16.mxu1 %v3910_v0 }
 0x102   : > { %2513 = vmatmul.mubr.msk.bf16.gmra.mxu0 %vm456_vm0, %v2632_v50  ;;  %2515 = vmatmul.mubr.msk.bf16.gmra.mxu1 %vm456_vm0, %v2632_v50 }
 0x103   : > { %1007 = vmatprep.mubr.bf16.mxu0 %v3910_v0  ;;  %1160 = vmatprep.mubr.bf16.mxu1 %v3910_v0 }
 0x1ba   : > { %v663_v51 = vpop.f32.mrf.mxu0  ;;  %v716_v52 = vpop.f32.mrf.mxu1 }
 0x1bb   : > { %v664_v9 = vadd.f32 %v663_v51, %v2909_v5  ;;  %v717_v36 = vadd.f32 %v716_v52, %v2909_v5  ;;  %v2633_v52 = vld [vmem:[%s3905_s2 + $0x20] sm:$0xff]  }
 0x1bc   : > { %v665_v53 = vpop.f32.mrf.mxu0  ;;  %v718_v54 = vpop.f32.mrf.mxu1 }
 0x1bd   : > { %v666_v19 = vadd.f32 %v665_v53, %v2909_v5  ;;  %v719_v20 = vadd.f32 %v718_v54, %v2909_v5  ;;  %v735_v47 = vmax.f32 %v664_v9, 0.0  ;;  %v737_v49 = vmax.f32 %v717_v36, 0.0  ;;  %v2634_v53 = vld [vmem:[%s3905_s2 + $0x28] sm:$0xff]   ;;  %v2635_v54 = vld [vmem:[%s3905_s2 + $0x30] sm:$0xff]   ;;  %v3011_v9 = vpop.permute.xlu0 %831 }
 0x1be   : > { %v667_v55 = vpop.f32.mrf.mxu0  ;;  %v720_v58 = vpop.f32.mrf.mxu1  ;;  %3983 = vst [vmem:[#allocation10_spill] sm:$0xff] %v3011_v9 }
 0x1bf   : > { %v668_v24 = vadd.f32 %v667_v55, %v2911_v7  ;;  %v721_v25 = vadd.f32 %v720_v58, %v2911_v7  ;;  %v736_v37 = vmax.f32 %v666_v19, 0.0  ;;  %v738_v40 = vmax.f32 %v719_v20, 0.0  ;;  %v2636_v55 = vld [vmem:[%s3905_s2 + $0x38] sm:$0xff]   ;;  %v2637_v58 = vld [vmem:[%s3905_s2 + $0x40] sm:$0xff]  }
 0x1c0   : > { %v669_v61 = vpop.f32.mrf.mxu0  ;;  %v722_v62 = vpop.f32.mrf.mxu1  ;;  %v3034_v19 = vld.sshfl [vmem:[%s3907_s4] sm:$0x33 pattern:$0x76325410] }
 0x1c1   : > { %v670_v10 = vadd.f32 %v669_v61, %v2911_v7  ;;  %v723_v14 = vadd.f32 %v722_v62, %v2911_v7  ;;  %v739_v41 = vmax.f32 %v668_v24, 0.0  ;;  %v741_v44 = vmax.f32 %v721_v25, 0.0  ;;  %v2638_v61 = vld [vmem:[%s3905_s2 + $0x48] sm:$0xff]   ;;  %v2639_v62 = vld [vmem:[%s3905_s2 + $0x50] sm:$0xff]   ;;  %3989 = vst [vmem:[#allocation16_spill] sm:$0xff] %v3034_v19 }
 0x1c2   : > { %v673_v63 = vpop.f32.mrf.mxu0  ;;  %v726_v1 = vpop.f32.mrf.mxu1  ;;  %v3038_v20 = vcombine.high %v3034_v19, %v3034_v19 }
 0x1c3   : > { %v674_v15 = vadd.f32 %v673_v63, %v2905_v56  ;;  %v727_v21 = vadd.f32 %v726_v1, %v2905_v56  ;;  %v740_v28 = vmax.f32 %v670_v10, 0.0  ;;  %v742_v32 = vmax.f32 %v723_v14, 0.0  ;;  %v2640_v63 = vld [vmem:[%s3905_s2 + $0x58] sm:$0xff]   ;;  %v2641_v1 = vld [vmem:[%s3905_s2 + $0x60] sm:$0xff]   ;;  %v3013_v10 = vpop.permute.xlu1 %836 }
 0x1c4   : > { %v675_v3 = vpop.f32.mrf.mxu0  ;;  %v728_v6 = vpop.f32.mrf.mxu1  ;;  %v751_v50 = vpack.c.bf16 %v739_v41, %v735_v47  ;;  %v753_v51 = vpack.c.bf16 %v741_v44, %v737_v49  ;;  %3984 = vst [vmem:[#allocation11_spill] sm:$0xff] %v3013_v10  ;;  %3990 = vst [vmem:[#allocation17_spill] sm:$0xff] %v3038_v20 }
 0x1c5   : > { %v676_v11 = vadd.f32 %v675_v3, %v2905_v56  ;;  %v729_v16 = vadd.f32 %v728_v6, %v2905_v56  ;;  %v743_v33 = vmax.f32 %v674_v15, 0.0  ;;  %v745_v38 = vmax.f32 %v727_v21, 0.0  ;;  %v2642_v3 = vld [vmem:[%s3905_s2 + $0x68] sm:$0xff]   ;;  %v2643_v6 = vld [vmem:[%s3905_s2 + $0x70] sm:$0xff]  }
 0x1c6   : > { %v677_v8 = vpop.f32.mrf.mxu0  ;;  %v730_v13 = vpop.f32.mrf.mxu1  ;;  %v752_v46 = vpack.c.bf16 %v740_v28, %v736_v37  ;;  %v754_v48 = vpack.c.bf16 %v742_v32, %v738_v40 }
 0x1c7   : > { %v678_v12 = vadd.f32 %v677_v8, %v2907_v60  ;;  %v731_v17 = vadd.f32 %v730_v13, %v2907_v60  ;;  %v744_v29 = vmax.f32 %v676_v11, 0.0  ;;  %v746_v34 = vmax.f32 %v729_v16, 0.0  ;;  %v2644_v8 = vld [vmem:[%s3905_s2 + $0x78] sm:$0xff]   ;;  %v3015_v11 = vpop.permute.xlu0 %821 }
 0x1c8   : > { %v679_v18 = vpop.f32.mrf.mxu0  ;;  %v732_v23 = vpop.f32.mrf.mxu1  ;;  %3985 = vst [vmem:[#allocation12_spill] sm:$0xff] %v3015_v11 }
 0x1c9   : > { %v680_v22 = vadd.f32 %v679_v18, %v2907_v60  ;;  %v747_v26 = vmax.f32 %v678_v12, 0.0  ;;  %v733_v27 = vadd.f32 %v732_v23, %v2907_v60  ;;  %v749_v30 = vmax.f32 %v731_v17, 0.0  ;;  %v3017_v12 = vpop.permute.xlu1 %826 }
 0x1ca   : > { %3986 = vst [vmem:[#allocation13_spill] sm:$0xff] %v3017_v12 }
 0x1cb   : > { %v748_v31 = vmax.f32 %v680_v22, 0.0  ;;  %v750_v35 = vmax.f32 %v733_v27, 0.0  ;;  %v755_v42 = vpack.c.bf16 %v747_v26, %v743_v33  ;;  %v757_v45 = vpack.c.bf16 %v749_v30, %v745_v38  ;;  %v3019_v13 = vpop.permute.xlu0 %811 }
 0x1cc   : > { %3987 = vst [vmem:[#allocation14_spill] sm:$0xff] %v3019_v13 }
 0x1cd   : > { %v756_v39 = vpack.c.bf16 %v748_v31, %v744_v29  ;;  %v758_v43 = vpack.c.bf16 %v750_v35, %v746_v34  ;;  %v3021_v14 = vpop.permute.xlu1 %816 }
 0x1ce   : > { %3988 = vst [vmem:[#allocation15_spill] sm:$0xff] %v3021_v14 }
 0x1cf   : > { %987 = vmatprep.subr.bf16.mxu0 %v756_v39  ;;  %1140 = vmatprep.subr.bf16.mxu1 %v758_v43  ;;  %v3023_v15 = vpop.permute.xlu0 %801 }
 0x1d0   : > { %988 = vmatpush1.bf16.msra.mxu0 %v755_v42  ;;  %1141 = vmatpush1.bf16.msra.mxu1 %v757_v45 }
 0x1d1   : > { %989 = vmatprep.subr.bf16.mxu0 %v752_v46  ;;  %1142 = vmatprep.subr.bf16.mxu1 %v754_v48  ;;  %v3025_v16 = vpop.permute.xlu1 %806 }
 0x1d3   : > { %v3027_v17 = vpop.permute.xlu0 %791 }
 0x1d4   : > { %990 = vmatpush1.bf16.msra.mxu0 %v751_v50  ;;  %1143 = vmatpush1.bf16.msra.mxu1 %v753_v51 }
 0x1d5   : > { %v3029_v18 = vpop.permute.xlu1 %796 }
 0x1d7   : > { %2528 = vmatmul.mubr.msk.bf16.vlgmr.msra.gmra.mxu0 %vm456_vm0, %v2633_v52  ;;  %2540 = vmatmul.mubr.msk.bf16.vlgmr.msra.gmra.mxu1 %vm456_vm0, %v2633_v52  ;;  %v3044_v21 = vpop.permute.xlu0 %781 }
 0x1d8   : > { %1017 = vmatprep.mubr.bf16.mxu0 %v3910_v0  ;;  %1170 = vmatprep.mubr.bf16.mxu1 %v3910_v0  ;;  %3991 = vst [vmem:[#allocation18_spill] sm:$0xff] %v3044_v21 }
 0x1d9   : > { %v3046_v22 = vpop.permute.xlu1 %786 }
 0x1db   : > { %v3048_v23 = vpop.permute.xlu0 %771 }
 0x1dc   : > { %3992 = vst [vmem:[#allocation19_spill] sm:$0xff] %v3048_v23 }
 0x1dd   : > { %v3050_v24 = vpop.permute.xlu1 %776 }
 0x1de   : > { %3993 = vst [vmem:[#allocation20_spill] sm:$0xff] %v3050_v24 }
 0x1df   : > { %2529 = vmatmul.mubr.msk.bf16.gmra.mxu0 %vm456_vm0, %v2634_v53  ;;  %2541 = vmatmul.mubr.msk.bf16.gmra.mxu1 %vm456_vm0, %v2634_v53  ;;  %v3052_v27 = vpop.permute.xlu0 %761 }
 0x1e0   : > { %1027 = vmatprep.mubr.bf16.mxu0 %v3910_v0  ;;  %1180 = vmatprep.mubr.bf16.mxu1 %v3910_v0  ;;  %3994 = vst [vmem:[#allocation21_spill] sm:$0xff] %v3052_v27 }
 0x1e1   : > { %v3059_v31 = vpop.permute.xlu1 %766 }
 0x1e2   : > { %3995 = vst [vmem:[#allocation22_spill] sm:$0xff] %v3059_v31 }
 0x1e7   : > { %2530 = vmatmul.mubr.msk.bf16.gmra.mxu0 %vm456_vm0, %v2635_v54  ;;  %2542 = vmatmul.mubr.msk.bf16.gmra.mxu1 %vm456_vm0, %v2635_v54 }
 0x1e8   : > { %1037 = vmatprep.mubr.bf16.mxu0 %v3910_v0  ;;  %1190 = vmatprep.mubr.bf16.mxu1 %v3910_v0 }
 0x1ef   : > { %2531 = vmatmul.mubr.msk.bf16.gmra.mxu0 %vm456_vm0, %v2636_v55  ;;  %2543 = vmatmul.mubr.msk.bf16.gmra.mxu1 %vm456_vm0, %v2636_v55 }
 0x1f0   : > { %1047 = vmatprep.mubr.bf16.mxu0 %v3910_v0  ;;  %1200 = vmatprep.mubr.bf16.mxu1 %v3910_v0 }
 0x1f7   : > { %2532 = vmatmul.mubr.msk.bf16.gmra.mxu0 %vm456_vm0, %v2637_v58  ;;  %2544 = vmatmul.mubr.msk.bf16.gmra.mxu1 %vm456_vm0, %v2637_v58 }
 0x1f8   : > { %1057 = vmatprep.mubr.bf16.mxu0 %v3910_v0  ;;  %1210 = vmatprep.mubr.bf16.mxu1 %v3910_v0 }
 0x1ff   : > { %2533 = vmatmul.mubr.msk.bf16.gmra.mxu0 %vm456_vm0, %v2638_v61  ;;  %2545 = vmatmul.mubr.msk.bf16.gmra.mxu1 %vm456_vm0, %v2638_v61 }
 0x200   : > { %1067 = vmatprep.mubr.bf16.mxu0 %v3910_v0  ;;  %1220 = vmatprep.mubr.bf16.mxu1 %v3910_v0 }
 0x207   : > { %2534 = vmatmul.mubr.msk.bf16.gmra.mxu0 %vm456_vm0, %v2639_v62  ;;  %2546 = vmatmul.mubr.msk.bf16.gmra.mxu1 %vm456_vm0, %v2639_v62 }
 0x208   : > { %1077 = vmatprep.mubr.bf16.mxu0 %v3910_v0  ;;  %1230 = vmatprep.mubr.bf16.mxu1 %v3910_v0 }
 0x20f   : > { %2535 = vmatmul.mubr.msk.bf16.gmra.mxu0 %vm456_vm0, %v2640_v63  ;;  %2547 = vmatmul.mubr.msk.bf16.gmra.mxu1 %vm456_vm0, %v2640_v63 }
 0x210   : > { %1087 = vmatprep.mubr.bf16.mxu0 %v3910_v0  ;;  %1240 = vmatprep.mubr.bf16.mxu1 %v3910_v0 }
 0x217   : > { %2536 = vmatmul.mubr.msk.bf16.gmra.mxu0 %vm456_vm0, %v2641_v1  ;;  %2548 = vmatmul.mubr.msk.bf16.gmra.mxu1 %vm456_vm0, %v2641_v1 }
 0x218   : > { %1097 = vmatprep.mubr.bf16.mxu0 %v3910_v0  ;;  %1250 = vmatprep.mubr.bf16.mxu1 %v3910_v0 }
 0x21f   : > { %2537 = vmatmul.mubr.msk.bf16.gmra.mxu0 %vm456_vm0, %v2642_v3  ;;  %2549 = vmatmul.mubr.msk.bf16.gmra.mxu1 %vm456_vm0, %v2642_v3 }
 0x220   : > { %1107 = vmatprep.mubr.bf16.mxu0 %v3910_v0  ;;  %1260 = vmatprep.mubr.bf16.mxu1 %v3910_v0 }
 0x227   : > { %2538 = vmatmul.mubr.msk.bf16.gmra.mxu0 %vm456_vm0, %v2643_v6  ;;  %2550 = vmatmul.mubr.msk.bf16.gmra.mxu1 %vm456_vm0, %v2643_v6 }
 0x228   : > { %1117 = vmatprep.mubr.bf16.mxu0 %v3910_v0  ;;  %1270 = vmatprep.mubr.bf16.mxu1 %v3910_v0 }
 0x22f   : > { %2539 = vmatmul.mubr.msk.bf16.gmra.mxu0 %vm456_vm0, %v2644_v8  ;;  %2551 = vmatmul.mubr.msk.bf16.gmra.mxu1 %vm456_vm0, %v2644_v8 }
 0x230   : > { %2553 = vmatprep.mubr.msk.bf16.mxu0 %vm1440_vm1, %v3038_v20  ;;  %2554 = vmatprep.mubr.msk.bf16.mxu1 %vm1440_vm1, %v3038_v20 }
 0x297   : > { %v1009_v25 = vpop.f32.mrf.mxu0  ;;  %v1162_v26 = vpop.f32.mrf.mxu1 }
 0x298   : > { %v1010_v29 = vadd.f32 %v1009_v25, %v3052_v27  ;;  %v1163_v32 = vadd.f32 %v1162_v26, %v3052_v27 }
 0x299   : > { %v3054_v28 = vpop.f32.mrf.mxu0  ;;  %v3057_v30 = vpop.f32.mrf.mxu1 }
 0x29a   : > { %v1281_v38 = vmax.f32 %v1010_v29, 0.0  ;;  %v1283_v41 = vmax.f32 %v1163_v32, 0.0 }
 0x29b   : > { %v1013_v33 = vpop.f32.mrf.mxu0  ;;  %v1166_v35 = vpop.f32.mrf.mxu1 }
 0x29c   : > { %v1014_v34 = vadd.f32 %v1013_v33, %v3059_v31  ;;  %v1167_v36 = vadd.f32 %v1166_v35, %v3059_v31 }
 0x29d   : > { %v1015_v37 = vpop.f32.mrf.mxu0  ;;  %v1168_v40 = vpop.f32.mrf.mxu1 }
 0x29e   : > { %v1285_v39 = vmax.f32 %v1014_v34, 0.0  ;;  %v1287_v42 = vmax.f32 %v1167_v36, 0.0  ;;  %v3109_v19 = vadd.f32 %v1015_v37, %v3059_v31 }
 0x29f   : > { %v1019_v43 = vpop.f32.mrf.mxu0  ;;  %v1172_v45 = vpop.f32.mrf.mxu1 }
 0x2a0   : > { %v3064_v44 = vpack.c.bf16 %v1285_v39, %v1281_v38  ;;  %v3066_v46 = vpack.c.bf16 %v1287_v42, %v1283_v41  ;;  %v1020_v48 = vadd.f32 %v1019_v43, %v3048_v23  ;;  %v1173_v50 = vadd.f32 %v1172_v45, %v3048_v23  ;;  %4006 = vst [vmem:[#allocation33_spill] sm:$0xff] %v3109_v19 }
 0x2a1   : > { %v1021_v47 = vpop.f32.mrf.mxu0  ;;  %v3069_v49 = vpop.f32.mrf.mxu1 }
 0x2a2   : > { %3996 = vst [vmem:[#allocation23_spill] sm:$0xff] %v3064_v44  ;;  %3997 = vst [vmem:[#allocation24_spill] sm:$0xff] %v3066_v46  ;;  %v1289_v58 = vmax.f32 %v1020_v48, 0.0  ;;  %v1291_v63 = vmax.f32 %v1173_v50, 0.0  ;;  %v3112_v46 = vadd.f32 %v1168_v40, %v3059_v31 }
 0x2a3   : > { %3998 = vst [vmem:[#allocation25_spill] sm:$0xff] %v3069_v49  ;;  %v1023_v51 = vpop.f32.mrf.mxu0  ;;  %v1176_v53 = vpop.f32.mrf.mxu1 }
 0x2a4   : > { %v1024_v52 = vadd.f32 %v1023_v51, %v3050_v24  ;;  %v1177_v54 = vadd.f32 %v1176_v53, %v3050_v24  ;;  %4007 = vst [vmem:[#allocation34_spill] sm:$0xff] %v3112_v46 }
 0x2a5   : > { %v1025_v55 = vpop.f32.mrf.mxu0  ;;  %v1178_v62 = vpop.f32.mrf.mxu1 }
 0x2a6   : > { %v1293_v61 = vmax.f32 %v1024_v52, 0.0  ;;  %v1295_v1 = vmax.f32 %v1177_v54, 0.0  ;;  %v3128_v31 = vadd.f32 %v1025_v55, %v3050_v24 }
 0x2a7   : > { %v3074_v3 = vpop.f32.mrf.mxu0  ;;  %v3078_v8 = vpop.f32.mrf.mxu1 }
 0x2a8   : > { %3999 = vst [vmem:[#allocation26_spill] sm:$0xff] %v3074_v3  ;;  %v3076_v6 = vpack.c.bf16 %v1293_v61, %v1289_v58  ;;  %4001 = vst [vmem:[#allocation28_spill] sm:$0xff] %v3078_v8  ;;  %v3080_v25 = vpack.c.bf16 %v1295_v1, %v1291_v63  ;;  %v3116_v8 = vadd.f32 %v3054_v28, %v3052_v27 }
 0x2a9   : > { %v1031_v26 = vpop.f32.mrf.mxu0  ;;  %v1184_v29 = vpop.f32.mrf.mxu1  ;;  %v3120_v3 = vadd.f32 %v3057_v30, %v3052_v27  ;;  %4011 = vst [vmem:[#allocation38_spill] sm:$0xff] %v3128_v31 }
 0x2aa   : > { %4000 = vst [vmem:[#allocation27_spill] sm:$0xff] %v3076_v6  ;;  %4002 = vst [vmem:[#allocation29_spill] sm:$0xff] %v3080_v25  ;;  %v3134_v28 = vadd.f32 %v1031_v26, %v3044_v21  ;;  %v3137_v30 = vadd.f32 %v1184_v29, %v3044_v21 }
 0x2ab   : > { %v3082_v32 = vpop.f32.mrf.mxu0  ;;  %v3084_v33 = vpop.f32.mrf.mxu1  ;;  %4008 = vst [vmem:[#allocation35_spill] sm:$0xff] %v3116_v8  ;;  %4009 = vst [vmem:[#allocation36_spill] sm:$0xff] %v3120_v3 }
 0x2ac   : > { %4003 = vst [vmem:[#allocation30_spill] sm:$0xff] %v3082_v32  ;;  %4004 = vst [vmem:[#allocation31_spill] sm:$0xff] %v3084_v33  ;;  %v3131_v32 = vadd.f32 %v1178_v62, %v3050_v24 }
 0x2ad   : > { %v1035_v34 = vpop.f32.mrf.mxu0  ;;  %v1188_v35 = vpop.f32.mrf.mxu1  ;;  %4013 = vst [vmem:[#allocation40_spill] sm:$0xff] %v3134_v28  ;;  %4014 = vst [vmem:[#allocation41_spill] sm:$0xff] %v3137_v30 }
 0x2ae   : > { %4012 = vst [vmem:[#allocation39_spill] sm:$0xff] %v3131_v32  ;;  %v3140_v33 = vadd.f32 %v1035_v34, %v3046_v22 }
 0x2af   : > { %v3086_v36 = vpop.f32.mrf.mxu0  ;;  %v3088_v38 = vpop.f32.mrf.mxu1 }
 0x2b0   : > { %4005 = vst [vmem:[#allocation32_spill] sm:$0xff] %v3088_v38  ;;  %v3125_v38 = vadd.f32 %v1021_v47, %v3048_v23  ;;  %v3143_v47 = vadd.f32 %v1188_v35, %v3046_v22 }
 0x2b1   : > { %v1041_v39 = vpop.f32.mrf.mxu0  ;;  %v1194_v41 = vpop.f32.mrf.mxu1 }
 0x2b2   : > { %4010 = vst [vmem:[#allocation37_spill] sm:$0xff] %v3125_v38  ;;  %4015 = vst [vmem:[#allocation42_spill] sm:$0xff] %v3143_v47  ;;  %v3146_v37 = vadd.f32 %v1041_v39, %v3027_v17  ;;  %v3149_v55 = vadd.f32 %v1194_v41, %v3027_v17 }
 0x2b3   : > { %v3090_v42 = vpop.f32.mrf.mxu0  ;;  %v3092_v43 = vpop.f32.mrf.mxu1 }
 0x2b5   : > { %v1045_v45 = vpop.f32.mrf.mxu0  ;;  %v1198_v48 = vpop.f32.mrf.mxu1 }
 0x2b6   : > { %v3152_v26 = vadd.f32 %v1045_v45, %v3029_v18  ;;  %v3155_v29 = vadd.f32 %v1198_v48, %v3029_v18 }
 0x2b7   : > { %v3094_v50 = vpop.f32.mrf.mxu0  ;;  %v3096_v51 = vpop.f32.mrf.mxu1 }
 0x2b9   : > { %v1051_v52 = vpop.f32.mrf.mxu0  ;;  %v1204_v53 = vpop.f32.mrf.mxu1 }
 0x2ba   : > { %v3158_v24 = vadd.f32 %v1051_v52, %v3023_v15  ;;  %v3161_v34 = vadd.f32 %v1204_v53, %v3023_v15 }
 0x2bb   : > { %v3098_v54 = vpop.f32.mrf.mxu0  ;;  %v3100_v58 = vpop.f32.mrf.mxu1 }
 0x2bd   : > { %v1055_v61 = vpop.f32.mrf.mxu0  ;;  %v1208_v63 = vpop.f32.mrf.mxu1 }
 0x2be   : > { %v3164_v39 = vadd.f32 %v1055_v61, %v3025_v16  ;;  %v3167_v41 = vadd.f32 %v1208_v63, %v3025_v16 }
 0x2bf   : > { %v3102_v1 = vpop.f32.mrf.mxu0  ;;  %v3104_v0 = vpop.f32.mrf.mxu1 }
 0x2c1   : > { %v1061_v20 = vpop.f32.mrf.mxu0  ;;  %v1214_v60 = vpop.f32.mrf.mxu1 }
 0x2c2   : > { %v3170_v46 = vadd.f32 %v1061_v20, %v3019_v13  ;;  %v3173_v45 = vadd.f32 %v1214_v60, %v3019_v13 }
 0x2c3   : > { %v1063_v56 = vpop.f32.mrf.mxu0  ;;  %v1216_v7 = vpop.f32.mrf.mxu1 }
 0x2c4   : > { %v3176_v52 = vadd.f32 %v1063_v56, %v3021_v14  ;;  %v3179_v53 = vadd.f32 %v1216_v7, %v3021_v14 }
 0x2c5   : > { %v1065_v5 = vpop.f32.mrf.mxu0  ;;  %v1218_v2 = vpop.f32.mrf.mxu1 }
 0x2c6   : > { %v3182_v19 = vadd.f32 %v1065_v5, %v3021_v14  ;;  %v3185_v61 = vadd.f32 %v1218_v2, %v3021_v14 }
 0x2c7   : > { %v1069_v57 = vpop.f32.mrf.mxu0  ;;  %v3106_v4 = vpop.f32.mrf.mxu1 }
 0x2c8   : > { %v3188_v20 = vadd.f32 %v1069_v57, %v3015_v11 }
 0x2c9   : > { %v1071_v59 = vpop.f32.mrf.mxu0  ;;  %v1224_v44 = vpop.f32.mrf.mxu1 }
 0x2ca   : > { %v1072_v32 = vadd.f32 %v1071_v59, %v3015_v11  ;;  %v1225_v57 = vadd.f32 %v1224_v44, %v3015_v11 }
 0x2cb   : > { %v1073_v25 = vpop.f32.mrf.mxu0  ;;  %v1226_v6 = vpop.f32.mrf.mxu1 }
 0x2cd   : > { %v1075_v49 = vpop.f32.mrf.mxu0  ;;  %v1228_v40 = vpop.f32.mrf.mxu1 }
 0x2ce   : > { %v1076_v60 = vadd.f32 %v1075_v49, %v3017_v12  ;;  %v1229_v7 = vadd.f32 %v1228_v40, %v3017_v12  ;;  %v1227_v40 = vadd.f32 %v1226_v6, %v3017_v12  ;;  %v1223_v6 = vadd.f32 %v3106_v4, %v3015_v11  ;;  %v3219_v4 = vpop.permute.xlu0 %871 }
 0x2cf   : > { %v1079_v27 = vpop.f32.mrf.mxu0  ;;  %v1232_v62 = vpop.f32.mrf.mxu1  ;;  %4017 = vst [vmem:[#allocation44_spill] sm:$0xff] %v3219_v4 }
 0x2d0   : > { %v1080_v8 = vadd.f32 %v1079_v27, %v3011_v9  ;;  %v1233_v49 = vadd.f32 %v1232_v62, %v3011_v9  ;;  %v1336_v44 = vmax.f32 %v1229_v7, 0.0  ;;  %v1335_v7 = vmax.f32 %v1227_v40, 0.0 }
 0x2d1   : > { %v1081_v35 = vpop.f32.mrf.mxu0  ;;  %v1234_v48 = vpop.f32.mrf.mxu1 }
 0x2d2   : > { %v1082_v38 = vadd.f32 %v1081_v35, %v3011_v9  ;;  %v1235_v5 = vadd.f32 %v1234_v48, %v3011_v9  ;;  %v1337_v62 = vmax.f32 %v1080_v8, 0.0  ;;  %v1326_v8 = vmax.f32 %v3182_v19, 0.0  ;;  %v3227_v19 = vpop.permute.xlu1 %876 }
 0x2d3   : > { %v1083_v63 = vpop.f32.mrf.mxu0  ;;  %v1236_v3 = vpop.f32.mrf.mxu1  ;;  %4018 = vst [vmem:[#allocation45_spill] sm:$0xff] %v3227_v19 }
 0x2d4   : > { %v1084_v56 = vadd.f32 %v1083_v63, %v3013_v10  ;;  %v1237_v2 = vadd.f32 %v1236_v3, %v3013_v10  ;;  %v1074_v63 = vadd.f32 %v1073_v25, %v3017_v12  ;;  %v1334_v3 = vmax.f32 %v1076_v60, 0.0 }
 0x2d5   : > { %v1085_v14 = vpop.f32.mrf.mxu0  ;;  %v1238_v30 = vpop.f32.mrf.mxu1  ;;  %v1338_v28 = vmax.f32 %v1082_v38, 0.0  ;;  %v1340_v9 = vmax.f32 %v1235_v5, 0.0  ;;  %v1330_v25 = vmax.f32 %v1072_v32, 0.0  ;;  %v1332_v60 = vmax.f32 %v1225_v57, 0.0 }
 0x2d6   : > { %v1086_v35 = vadd.f32 %v1085_v14, %v3013_v10  ;;  %v1341_v31 = vmax.f32 %v1084_v56, 0.0  ;;  %v1239_v27 = vadd.f32 %v1238_v30, %v3013_v10  ;;  %v1343_v23 = vmax.f32 %v1237_v2, 0.0 }
 0x2d7   : > { %v3204_v48 = vpop.f32.mrf.mxu0  ;;  %v3206_v47 = vpop.f32.mrf.mxu1  ;;  %v1339_v56 = vmax.f32 %v1233_v49, 0.0  ;;  %v1333_v38 = vmax.f32 %v1074_v63, 0.0  ;;  %v1402_v5 = vpack.c.bf16 %v1334_v3, %v1330_v25  ;;  %v1060_v32 = vadd.f32 %v3102_v1, %v3019_v13 }
 0x2d8   : > { %v1342_v59 = vmax.f32 %v1086_v35, 0.0  ;;  %4016 = vst [vmem:[#allocation43_spill] sm:$0xff] %v3206_v47  ;;  %v1344_v14 = vmax.f32 %v1239_v27, 0.0  ;;  %v1405_v2 = vpack.c.bf16 %v1341_v31, %v1337_v62  ;;  %v1329_v31 = vmax.f32 %v3188_v20, 0.0 }
 0x2d9   : > { %v3208_v21 = vpop.f32.mrf.mxu0  ;;  %v3212_v10 = vpop.f32.mrf.mxu1  ;;  %v1407_v27 = vpack.c.bf16 %v1343_v23, %v1339_v56  ;;  %v1054_v23 = vadd.f32 %v3098_v54, %v3025_v16  ;;  %v1213_v49 = vadd.f32 %v3104_v0, %v3019_v13  ;;  %v1322_v63 = vmax.f32 %v3170_v46, 0.0 }
 0x2da   : > { %v1406_v30 = vpack.c.bf16 %v1342_v59, %v1338_v28  ;;  %v1408_v35 = vpack.c.bf16 %v1344_v14, %v1340_v9  ;;  %v1328_v28 = vmax.f32 %v3185_v61, 0.0  ;;  %v1404_v9 = vpack.c.bf16 %v1336_v44, %v1332_v60 }
 0x2db   : > { %v3214_v12 = vpop.f32.mrf.mxu0  ;;  %v3217_v47 = vpop.f32.mrf.mxu1  ;;  %v1331_v1 = vmax.f32 %v1223_v6, 0.0  ;;  %v1207_v61 = vadd.f32 %v3100_v58, %v3025_v16  ;;  %v1324_v20 = vmax.f32 %v3173_v45, 0.0  ;;  %v1325_v3 = vmax.f32 %v3176_v52, 0.0 }
 0x2dc   : > { %1444 = vmatprep.subr.bf16.mxu0 %v1406_v30  ;;  %1485 = vmatprep.subr.bf16.mxu1 %v1408_v35  ;;  %v1401_v59 = vpack.c.bf16 %v1333_v38, %v1329_v31  ;;  %v1318_v0 = vmax.f32 %v3164_v39, 0.0  ;;  %v1327_v46 = vmax.f32 %v3179_v53, 0.0  ;;  %v1398_v44 = vpack.c.bf16 %v1326_v8, %v1322_v63 }
 0x2dd   : > { %v3225_v57 = vpop.f32.mrf.mxu0  ;;  %1445 = vmatpush1.bf16.msra.mxu0 %v1405_v2  ;;  %v3234_v40 = vpop.f32.mrf.mxu1  ;;  %1486 = vmatpush1.bf16.msra.mxu1 %v1407_v27  ;;  %v1403_v62 = vpack.c.bf16 %v1335_v7, %v1331_v1  ;;  %v1050_v6 = vadd.f32 %v3094_v50, %v3023_v15  ;;  %v1320_v58 = vmax.f32 %v3167_v41, 0.0  ;;  %v1321_v45 = vmax.f32 %v1060_v32, 0.0 }
 0x2de   : > { %1446 = vmatprep.subr.bf16.mxu0 %v1402_v5  ;;  %1487 = vmatprep.subr.bf16.mxu1 %v1404_v9  ;;  %v1400_v25 = vpack.c.bf16 %v1328_v28, %v1324_v20  ;;  %v3253_v56 = vadd.f32 %v3090_v42, %v3029_v18  ;;  %v1203_v39 = vadd.f32 %v3096_v51, %v3023_v15  ;;  %v1314_v53 = vmax.f32 %v3158_v24, 0.0  ;;  %v3260_v50 = vpop.permute.xlu0 %861  ;;  %v3267_v51 = vpop.permute.xlu1 %866  ;;  %v4021_v9 = vld [vmem:[#allocation30_spill] sm:$0xff] }
 0x2df   : > { %v3240_v54 = vpop.f32.mrf.mxu0  ;;  %v3244_v14 = vpop.f32.mrf.mxu1  ;;  %v1323_v30 = vmax.f32 %v1213_v49, 0.0  ;;  %4019 = vst [vmem:[#allocation46_spill] sm:$0xff] %v3260_v50  ;;  %v1197_v41 = vadd.f32 %v3092_v43, %v3029_v18  ;;  %v1316_v38 = vmax.f32 %v3161_v34, 0.0  ;;  %v1317_v2 = vmax.f32 %v1054_v23, 0.0  ;;  %4020 = vst [vmem:[#allocation47_spill] sm:$0xff] %v3267_v51 }
 0x2e0   : > { %v1397_v42 = vpack.c.bf16 %v1325_v3, %v1321_v45  ;;  %v1310_v24 = vmax.f32 %v3152_v26, 0.0  ;;  %v1319_v8 = vmax.f32 %v1207_v61, 0.0  ;;  %v1394_v7 = vpack.c.bf16 %v1318_v0, %v1314_v53  ;;  %v4022_v26 = vld [vmem:[#allocation32_spill] sm:$0xff]  ;;  %v4025_v45 = vld [vmem:[#allocation18_spill] sm:$0xff] }
 0x2e1   : > { %v3249_v52 = vpop.f32.mrf.mxu0  ;;  %1447 = vmatpush1.bf16.msra.mxu0 %v1401_v59  ;;  %v3258_v60 = vpop.f32.mrf.mxu1  ;;  %1488 = vmatpush1.bf16.msra.mxu1 %v1403_v62  ;;  %v1399_v5 = vpack.c.bf16 %v1327_v46, %v1323_v30  ;;  %v1040_v32 = vadd.f32 %v3086_v36, %v3027_v17  ;;  %v1312_v43 = vmax.f32 %v3155_v29, 0.0  ;;  %v1313_v34 = vmax.f32 %v1050_v6, 0.0  ;;  %v4023_v36 = vld [vmem:[#allocation31_spill] sm:$0xff]  ;;  %v4027_v53 = vld [vmem:[#allocation42_spill] sm:$0xff] }
 0x2e2   : > { %1448 = vmatprep.subr.bf16.mxu0 %v1398_v44  ;;  %1489 = vmatprep.subr.bf16.mxu1 %v1400_v25  ;;  %v1396_v28 = vpack.c.bf16 %v1320_v58, %v1316_v38  ;;  %v1034_v23 = vadd.f32 %v4021_v9, %v3046_v22  ;;  %v1193_v49 = vadd.f32 %v4022_v26, %v3027_v17  ;;  %v1306_v63 = vmax.f32 %v3146_v37, 0.0  ;;  %v3293_v58 = vpop.permute.xlu0 %851  ;;  %v4026_v25 = vld [vmem:[#allocation26_spill] sm:$0xff] }
 0x2e3   : > { %v3265_v35 = vpop.f32.mrf.mxu0  ;;  %v3270_v27 = vpop.f32.mrf.mxu1  ;;  %v1315_v1 = vmax.f32 %v1203_v39, 0.0  ;;  %v1187_v29 = vadd.f32 %v4023_v36, %v3046_v22  ;;  %v1308_v20 = vmax.f32 %v3149_v55, 0.0  ;;  %v1309_v3 = vmax.f32 %v3253_v56, 0.0  ;;  %4024 = vst [vmem:[#allocation30_spill] sm:$0xff] %v3293_v58  ;;  %v4033_v9 = vld [vmem:[#allocation38_spill] sm:$0xff] }
 0x2e4   : > { %v1393_v59 = vpack.c.bf16 %v1317_v2, %v1313_v34  ;;  %v1302_v46 = vmax.f32 %v3140_v33, 0.0  ;;  %v1311_v44 = vmax.f32 %v1197_v41, 0.0  ;;  %v1390_v37 = vpack.c.bf16 %v1310_v24, %v1306_v63  ;;  %v3298_v2 = vpop.permute.xlu1 %856  ;;  %v4030_v33 = vld [vmem:[#allocation25_spill] sm:$0xff]  ;;  %v4031_v24 = vld [vmem:[#allocation28_spill] sm:$0xff] }
 0x2e5   : > { %v3275_v31 = vpop.f32.mrf.mxu0  ;;  %1449 = vmatpush1.bf16.msra.mxu0 %v1397_v42  ;;  %v3282_v61 = vpop.f32.mrf.mxu1  ;;  %1490 = vmatpush1.bf16.msra.mxu1 %v1399_v5  ;;  %v1395_v62 = vpack.c.bf16 %v1319_v8, %v1315_v1  ;;  %v1030_v39 = vadd.f32 %v4026_v25, %v4025_v45  ;;  %v1304_v55 = vmax.f32 %v4027_v53, 0.0  ;;  %v1305_v30 = vmax.f32 %v1040_v32, 0.0  ;;  %4028 = vst [vmem:[#allocation32_spill] sm:$0xff] %v3298_v2  ;;  %v4029_v42 = vld [vmem:[#allocation19_spill] sm:$0xff] }
 0x2e6   : > { %1450 = vmatprep.subr.bf16.mxu0 %v1394_v7  ;;  %1491 = vmatprep.subr.bf16.mxu1 %v1396_v28  ;;  %v1392_v56 = vpack.c.bf16 %v1312_v43, %v1308_v20  ;;  %v1175_v41 = vadd.f32 %v4030_v33, %v4029_v42  ;;  %v1183_v8 = vadd.f32 %v4031_v24, %v4025_v45  ;;  %v4032_v7 = vld [vmem:[#allocation40_spill] sm:$0xff]  ;;  %v1307_v34 = vmax.f32 %v1193_v49, 0.0  ;;  %v4034_v43 = vld [vmem:[#allocation41_spill] sm:$0xff]  ;;  %v4035_v20 = vld [vmem:[#allocation39_spill] sm:$0xff] }
 0x2e7   : > { %v3288_v0 = vpop.f32.mrf.mxu0  ;;  %v3291_v6 = vpop.f32.mrf.mxu1  ;;  %v1298_v5 = vmax.f32 %v4032_v7, 0.0  ;;  %v1294_v32 = vmax.f32 %v4033_v9, 0.0  ;;  %v1300_v26 = vmax.f32 %v4034_v43, 0.0  ;;  %v1301_v63 = vmax.f32 %v1034_v23, 0.0  ;;  %v4036_v49 = vld [vmem:[#allocation35_spill] sm:$0xff]  ;;  %v4037_v9 = vld [vmem:[#allocation36_spill] sm:$0xff] }
 0x2e8   : > { %v1389_v1 = vpack.c.bf16 %v1309_v3, %v1305_v30  ;;  %v1303_v25 = vmax.f32 %v1187_v29, 0.0  ;;  %v1391_v33 = vpack.c.bf16 %v1311_v44, %v1307_v34  ;;  %v1282_v7 = vmax.f32 %v4036_v49, 0.0  ;;  %v4038_v43 = vld [vmem:[#allocation37_spill] sm:$0xff] }
 0x2e9   : > { %v1111_v38 = vpop.f32.mrf.mxu0  ;;  %1451 = vmatpush1.bf16.msra.mxu0 %v1393_v59  ;;  %v3305_v28 = vpop.f32.mrf.mxu1  ;;  %1492 = vmatpush1.bf16.msra.mxu1 %v1395_v62  ;;  %v1296_v59 = vmax.f32 %v4035_v20, 0.0  ;;  %v1386_v53 = vpack.c.bf16 %v1302_v46, %v1298_v5  ;;  %v1297_v11 = vmax.f32 %v1030_v39, 0.0  ;;  %v1388_v62 = vpack.c.bf16 %v1304_v55, %v1300_v26  ;;  %v4040_v44 = vld [vmem:[#allocation33_spill] sm:$0xff] }
 0x2ea   : > { %1452 = vmatprep.subr.bf16.mxu0 %v1390_v37  ;;  %1493 = vmatprep.subr.bf16.mxu1 %v1392_v56  ;;  %v1284_v13 = vmax.f32 %v4037_v9, 0.0  ;;  %v1290_v23 = vmax.f32 %v4038_v43, 0.0  ;;  %v1292_v3 = vmax.f32 %v1175_v41, 0.0  ;;  %v1299_v30 = vmax.f32 %v1183_v8, 0.0  ;;  %v3315_v20 = vpop.permute.xlu0 %841  ;;  %v3319_v55 = vpop.permute.xlu1 %846  ;;  %v4043_v9 = vld [vmem:[#allocation34_spill] sm:$0xff] }
 0x2eb   : > { %v3309_v36 = vpop.f32.mrf.mxu0  ;;  %v1266_v24 = vpop.f32.mrf.mxu1  ;;  %4039 = vst [vmem:[#allocation31_spill] sm:$0xff] %v3315_v20  ;;  %v1385_v29 = vpack.c.bf16 %v1301_v63, %v1297_v11  ;;  %v4041_v5 = vmax.f32 %v4040_v44, 0.0  ;;  %4042 = vst [vmem:[#allocation26_spill] sm:$0xff] %v3319_v55  ;;  %v4044_v41 = vmax.f32 %v4043_v9, 0.0  ;;  %v3329_v11 = vadd.f32 %v3212_v10, %v3315_v20 }
 0x2ec   : > { %v1387_v34 = vpack.c.bf16 %v1303_v25, %v1299_v30  ;;  %v1384_v49 = vpack.c.bf16 %v1296_v59, %v1292_v3  ;;  %v3333_v63 = vadd.f32 %v3225_v57, %v3319_v55  ;;  %v3337_v25 = vadd.f32 %v3234_v40, %v3319_v55  ;;  %v4045_v30 = vld [vmem:[#allocation27_spill] sm:$0xff] }
 0x2ed   : > { %v1115_v37 = vpop.f32.mrf.mxu0  ;;  %1453 = vmatpush1.bf16.msra.mxu0 %v1389_v1  ;;  %v1268_v56 = vpop.f32.mrf.mxu1  ;;  %1494 = vmatpush1.bf16.msra.mxu1 %v1391_v33  ;;  %v1378_v39 = vpack.c.bf16 %v4041_v5, %v1282_v7  ;;  %v1382_v1 = vpack.c.bf16 %v1294_v32, %v1290_v23  ;;  %v1380_v8 = vpack.c.bf16 %v4044_v41, %v1284_v13  ;;  %v4046_v5 = vld [vmem:[#allocation29_spill] sm:$0xff] }
 0x2ee   : > { %1454 = vmatprep.subr.bf16.mxu0 %v1386_v53  ;;  %1495 = vmatprep.subr.bf16.mxu1 %v1388_v62  ;;  %v3325_v53 = vadd.f32 %v3208_v21, %v3315_v20  ;;  %v3341_v13 = vadd.f32 %v3249_v52, %v3293_v58  ;;  %v3345_v21 = vadd.f32 %v3258_v60, %v3293_v58 }
 0x2ef   : > { %v1119_v46 = vpop.f32.mrf.mxu0  ;;  %v1272_v26 = vpop.f32.mrf.mxu1  ;;  %v3349_v10 = vadd.f32 %v3265_v35, %v3298_v2  ;;  %v3353_v40 = vadd.f32 %v3270_v27, %v3298_v2  ;;  %v3357_v59 = vadd.f32 %v3275_v31, %v3298_v2  ;;  %v3361_v52 = vadd.f32 %v3282_v61, %v3298_v2  ;;  %v4084_v2 = vld [vmem:[#allocation13_spill] sm:$0xff] }
 0x2f0   : > { %v3365_v60 = vadd.f32 %v3288_v0, %v3260_v50  ;;  %v1112_v33 = vadd.f32 %v1111_v38, %v3260_v50  ;;  %v1116_v7 = vadd.f32 %v1115_v37, %v3267_v51  ;;  %v1269_v43 = vadd.f32 %v1268_v56, %v3267_v51 }
 0x2f1   : > { %v1121_v32 = vpop.f32.mrf.mxu0  ;;  %1455 = vmatpush1.bf16.msra.mxu0 %v1385_v29  ;;  %v1274_v57 = vpop.f32.mrf.mxu1  ;;  %1496 = vmatpush1.bf16.msra.mxu1 %v1387_v34  ;;  %v1120_v61 = vadd.f32 %v1119_v46, %v3219_v4  ;;  %v1265_v38 = vadd.f32 %v3305_v28, %v3260_v50  ;;  %v1273_v37 = vadd.f32 %v1272_v26, %v3219_v4 }
 0x2f2   : > { %1456 = vmatprep.subr.bf16.mxu0 %v1382_v1  ;;  %1497 = vmatprep.subr.bf16.mxu1 %v1384_v49  ;;  %v1122_v27 = vadd.f32 %v1121_v32, %v3219_v4  ;;  %v1275_v23 = vadd.f32 %v1274_v57, %v3219_v4  ;;  %v1114_v56 = vadd.f32 %v3309_v36, %v3267_v51  ;;  %v1366_v49 = vmax.f32 %v1116_v7, 0.0  ;;  %v4081_v4 = vld [vmem:[#allocation14_spill] sm:$0xff] }
 0x2f3   : > { %v1123_v35 = vpop.f32.mrf.mxu0  ;;  %v1276_v31 = vpop.f32.mrf.mxu1  ;;  %v1267_v46 = vadd.f32 %v1266_v24, %v3267_v51  ;;  %v1368_v26 = vmax.f32 %v1269_v43, 0.0  ;;  %v1369_v32 = vmax.f32 %v1120_v61, 0.0  ;;  %v1362_v36 = vmax.f32 %v1112_v33, 0.0 }
 0x2f4   : > { %v1124_v62 = vadd.f32 %v1123_v35, %v3227_v19  ;;  %v1277_v0 = vadd.f32 %v1276_v31, %v3227_v19  ;;  %v1370_v9 = vmax.f32 %v1122_v27, 0.0  ;;  %v1372_v57 = vmax.f32 %v1275_v23, 0.0  ;;  %v4047_v31 = vld [vmem:[#allocation23_spill] sm:$0xff] }
 0x2f5   : > { %v1125_v3 = vpop.f32.mrf.mxu0  ;;  %1457 = vmatpush1.bf16.msra.mxu0 %v4045_v30  ;;  %v1278_v44 = vpop.f32.mrf.mxu1  ;;  %1498 = vmatpush1.bf16.msra.mxu1 %v4046_v5  ;;  %v1364_v30 = vmax.f32 %v1265_v38, 0.0  ;;  %v1367_v43 = vmax.f32 %v1267_v46, 0.0  ;;  %v1418_v61 = vpack.c.bf16 %v1366_v49, %v1362_v36  ;;  %v1361_v33 = vmax.f32 %v3365_v60, 0.0 }
 0x2f6   : > { %v1126_v29 = vadd.f32 %v1125_v3, %v3227_v19  ;;  %1458 = vmatprep.subr.bf16.mxu0 %v1378_v39  ;;  %v1373_v34 = vmax.f32 %v1124_v62, 0.0  ;;  %v1279_v1 = vadd.f32 %v1278_v44, %v3227_v19  ;;  %1499 = vmatprep.subr.bf16.mxu1 %v1380_v8  ;;  %v1375_v28 = vmax.f32 %v1277_v0, 0.0  ;;  %v4048_v62 = vld [vmem:[#allocation24_spill] sm:$0xff] }
 0x2f7   : > { %v1263_v39 = vadd.f32 %v3291_v6, %v3260_v50  ;;  %v1371_v3 = vmax.f32 %v1273_v37, 0.0  ;;  %v1365_v8 = vmax.f32 %v1114_v56, 0.0  ;;  %v1358_v0 = vmax.f32 %v3357_v59, 0.0 }
 0x2f8   : > { %v1374_v41 = vmax.f32 %v1126_v29, 0.0  ;;  %v1376_v35 = vmax.f32 %v1279_v1, 0.0  ;;  %v1421_v7 = vpack.c.bf16 %v1373_v34, %v1369_v32  ;;  %v1100_v29 = vadd.f32 %v3240_v54, %v3293_v58 }
 0x2f9   : > { %1459 = vmatpush1.bf16.msra.mxu0 %v4047_v31  ;;  %1500 = vmatpush1.bf16.msra.mxu1 %v4048_v62  ;;  %v1423_v23 = vpack.c.bf16 %v1375_v28, %v1371_v3  ;;  %v1360_v6 = vmax.f32 %v3361_v52, 0.0  ;;  %v1420_v37 = vpack.c.bf16 %v1368_v26, %v1364_v30  ;;  %v1094_v38 = vadd.f32 %v3214_v12, %v3319_v55  ;;  %v1543_v31 = vld [vmem:[%s2751_s29 + $0x78] sm:$0xff]  ;;  %v1536_v62 = vld [vmem:[%s2751_s29 + $0x10] sm:$0xff] }
 0x2fa   : > { %v1422_v24 = vpack.c.bf16 %v1374_v41, %v1370_v9  ;;  %v1424_v27 = vpack.c.bf16 %v1376_v35, %v1372_v57  ;;  %v1253_v59 = vadd.f32 %v3244_v14, %v3293_v58  ;;  %v1354_v44 = vmax.f32 %v3341_v13, 0.0  ;;  %v1541_v35 = vld [vmem:[%s2751_s29 + $0x58] sm:$0xff]  ;;  %v1538_v30 = vld [vmem:[%s2751_s29 + $0x30] sm:$0xff]  ;;  %v4085_v58 = vld [vmem:[#allocation10_spill] sm:$0xff] }
 0x2fb   : > { %v1363_v5 = vmax.f32 %v1263_v39, 0.0  ;;  %v1247_v54 = vadd.f32 %v3217_v47, %v3319_v55  ;;  %v1356_v52 = vmax.f32 %v3345_v21, 0.0  ;;  %v1357_v60 = vmax.f32 %v3349_v10, 0.0  ;;  %v4049_v21 = vld [vmem:[#allocation43_spill] sm:$0xff] }
 0x2fc   : > { %1468 = vmatprep.subr.bf16.mxu0 %v1422_v24  ;;  %1509 = vmatprep.subr.bf16.mxu1 %v1424_v27  ;;  %v1417_v56 = vpack.c.bf16 %v1365_v8, %v1361_v33  ;;  %v1350_v46 = vmax.f32 %v3333_v63, 0.0  ;;  %v1359_v12 = vmax.f32 %v3353_v40, 0.0  ;;  %v1414_v34 = vpack.c.bf16 %v1358_v0, %v1354_v44  ;;  %v1539_v27 = vld [vmem:[%s2751_s29 + $0x38] sm:$0xff] }
 0x2fd   : > { %1469 = vmatpush2.bf16.msra.mxu0 %v1421_v7  ;;  %1510 = vmatpush2.bf16.msra.mxu1 %v1423_v23  ;;  %v1419_v14 = vpack.c.bf16 %v1367_v43, %v1363_v5  ;;  %v1090_v13 = vadd.f32 %v3204_v48, %v3315_v20  ;;  %v1352_v1 = vmax.f32 %v3337_v25, 0.0  ;;  %v1353_v47 = vmax.f32 %v1100_v29, 0.0  ;;  %v1540_v48 = vld [vmem:[%s2751_s29 + $0x50] sm:$0xff]  ;;  %v1537_v7 = vld [vmem:[%s2751_s29 + $0x18] sm:$0xff] }
 0x2fe   : > { %1470 = vmatprep.subr.bf16.mxu0 %v1418_v61  ;;  %1511 = vmatprep.subr.bf16.mxu1 %v1420_v37  ;;  %v1416_v49 = vpack.c.bf16 %v1360_v6, %v1356_v52  ;;  %v1243_v10 = vadd.f32 %v4049_v21, %v3315_v20  ;;  %v1346_v63 = vmax.f32 %v3325_v53, 0.0  ;;  %v1355_v40 = vmax.f32 %v1253_v59, 0.0  ;;  %v1542_v25 = vld [vmem:[%s2751_s29 + $0x70] sm:$0xff]  ;;  %v2646_v59 = vld [vmem:[%s3905_s2 + $0x8] sm:$0xff]  }
 0x2ff   : > { %v1348_v9 = vmax.f32 %v3329_v11, 0.0  ;;  %v1349_v28 = vmax.f32 %v1094_v38, 0.0  ;;  %v1413_v41 = vpack.c.bf16 %v1357_v60, %v1353_v47  ;;  %v1351_v26 = vmax.f32 %v1247_v54, 0.0  ;;  %v4050_v29 = vld [vmem:[#allocation16_spill] sm:$0xff]  ;;  %v2645_v38 = vld [vmem:[%s3905_s2] sm:$0xff]   ;;  %v3438_v54 = vpop.permute.xlu0 %1427  ;;  %v4086_v20 = vld [vmem:[#allocation11_spill] sm:$0xff] }
 0x300   : > { %v1410_v32 = vpack.c.bf16 %v1350_v46, %v1346_v63  ;;  %v1415_v57 = vpack.c.bf16 %v1359_v12, %v1355_v40  ;;  %v1345_v53 = vmax.f32 %v1090_v13, 0.0  ;;  %v1347_v36 = vmax.f32 %v1243_v10, 0.0  ;;  %4052 = vst [vmem:[#allocation42_spill] sm:$0xff] %v3438_v54 }
 0x301   : > { %1471 = vmatpush2.bf16.msra.mxu0 %v1417_v56  ;;  %1512 = vmatpush2.bf16.msra.mxu1 %v1419_v14  ;;  %v1412_v39 = vpack.c.bf16 %v1352_v1, %v1348_v9  ;;  %v2560_v11 = vcombine.high %v1540_v48, %v1542_v25  ;;  %v2562_v24 = vcombine.high %v1541_v35, %v1543_v31  ;;  %v4051_v37 = vmov 0  }
 0x302   : > { %1472 = vmatprep.subr.bf16.mxu0 %v1414_v34  ;;  %1513 = vmatprep.subr.bf16.mxu1 %v1416_v49  ;;  %v1409_v3 = vpack.c.bf16 %v1349_v28, %v1345_v53  ;;  %v1411_v8 = vpack.c.bf16 %v1351_v26, %v1347_v36  ;;  %v2559_v0 = vcombine.low %v1540_v48, %v1542_v25  ;;  %v4053_v53 = vld [vmem:[#allocation3_spill] sm:$0xff]  ;;  %v4054_v36 = vld [vmem:[#allocation5_spill] sm:$0xff] }
 0x303   : > { %v2561_v43 = vcombine.low %v1541_v35, %v1543_v31  ;;  %v2556_v61 = vcombine.high %v1536_v62, %v1538_v30  ;;  %v2558_v23 = vcombine.high %v1537_v7, %v1539_v27  ;;  %v2555_v6 = vcombine.low %v1536_v62, %v1538_v30  ;;  %v4056_v62 = vld [vmem:[#allocation4_spill] sm:$0xff] }
 0x304   : > { %v2557_v33 = vcombine.low %v1537_v7, %v1539_v27 }
 0x305   : > { %1473 = vmatpush2.bf16.msra.mxu0 %v1413_v41  ;;  %1514 = vmatpush2.bf16.msra.mxu1 %v1415_v57 }
 0x306   : > { %1474 = vmatprep.subr.bf16.mxu0 %v1410_v32  ;;  %1515 = vmatprep.subr.bf16.mxu1 %v1412_v39 }
 0x309   : > { %1475 = vmatpush2.bf16.msra.mxu0 %v1409_v3  ;;  %1516 = vmatpush2.bf16.msra.mxu1 %v1411_v8  ;;  %v4055_v3 = vld [vmem:[#allocation2_spill] sm:$0xff] }
 0x30a   : > { %1596 = vmatprep.subr.bf16.mxu0 %v2560_v11  ;;  %1649 = vmatprep.subr.bf16.mxu1 %v2562_v24 }
 0x30c   : > { %1477 = vmatmul.mubr.bf16.vlgmr.msra.gmra.mxu0 %v4050_v29  ;;  %1518 = vmatmul.mubr.bf16.vlgmr.msra.gmra.mxu1 %v4050_v29 }
 0x30d   : > { %1597 = vmatpush1.bf16.msra.mxu0 %v2559_v0  ;;  %1650 = vmatpush1.bf16.msra.mxu1 %v2561_v43 }
 0x30e   : > { %1598 = vmatprep.subr.bf16.mxu0 %v2556_v61  ;;  %1651 = vmatprep.subr.bf16.mxu1 %v2558_v23 }
 0x30f   : > { %1616 = vmatprep.mubr.bf16.mxu0 %v4051_v37  ;;  %1669 = vmatprep.mubr.bf16.mxu1 %v4051_v37 }
 0x311   : > { %1599 = vmatpush1.bf16.msra.mxu0 %v2555_v6  ;;  %1652 = vmatpush1.bf16.msra.mxu1 %v2557_v33 }
 0x314   : > { %2563 = vmatmul.mubr.msk.bf16.vlgmr.msra.gmra.mxu0 %vm456_vm0, %v2645_v38  ;;  %2565 = vmatmul.mubr.msk.bf16.vlgmr.msra.gmra.mxu1 %vm456_vm0, %v2645_v38 }
 0x315   : > { %1626 = vmatprep.mubr.bf16.mxu0 %v4051_v37  ;;  %1679 = vmatprep.mubr.bf16.mxu1 %v4051_v37 }
 0x31c   : > { %2564 = vmatmul.mubr.msk.bf16.gmra.mxu0 %vm456_vm0, %v2646_v59  ;;  %2566 = vmatmul.mubr.msk.bf16.gmra.mxu1 %vm456_vm0, %v2646_v59 }
 0x31d   : > { %1746 = vmatprep.mubr.bf16.mxu0 %v4051_v37  ;;  %1799 = vmatprep.mubr.bf16.mxu1 %v4051_v37 }
 0x3cc   : > { %v1478_v44 = vpop.f32.mrf.mxu0  ;;  %v1519_v5 = vpop.f32.mrf.mxu1 }
 0x3cd   : > { %v1479_v60 = vadd.f32 %v1478_v44, %v3438_v54  ;;  %v1520_v12 = vadd.f32 %v1519_v5, %v3438_v54 }
 0x3ce   : > { %v1480_v52 = vpop.f32.mrf.mxu0  ;;  %v1521_v46 = vpop.f32.mrf.mxu1 }
 0x3cf   : > { %v1481_v56 = vadd.f32 %v1480_v52, %v3438_v54  ;;  %v1522_v34 = vadd.f32 %v1521_v46, %v3438_v54 }
 0x3d0   : > { %v1482_v14 = vpop.f32.mrf.mxu0  ;;  %v1523_v1 = vpop.f32.mrf.mxu1 }
 0x3d1   : > { %v1530_v13 = vcombine.low %v1479_v60, %v1481_v56  ;;  %v1531_v47 = vcombine.low %v1520_v12, %v1522_v34 }
 0x3d2   : > { %v1483_v49 = vpop.f32.mrf.mxu0  ;;  %v1524_v21 = vpop.f32.mrf.mxu1 }
 0x3d3   : > { %1534 = vst [vmem:[%s3447_s16] sm:$0x77] %v1530_v13  ;;  %1535 = vst [vmem:[%s3447_s16 + $0x8] sm:$0x77] %v1531_v47 }
 0x3d4   : > { %v1618_v10 = vpop.f32.mrf.mxu0  ;;  %v1671_v63 = vpop.f32.mrf.mxu1 }
 0x3d5   : > { %v1619_v39 = vadd.f32 %v1618_v10, %v4053_v53  ;;  %v1672_v47 = vadd.f32 %v1671_v63, %v4053_v53 }
 0x3d6   : > { %v1620_v40 = vpop.f32.mrf.mxu0  ;;  %v1673_v9 = vpop.f32.mrf.mxu1 }
 0x3d7   : > { %v1621_v23 = vadd.f32 %v1620_v40, %v4053_v53  ;;  %v1674_v29 = vadd.f32 %v1673_v9, %v4053_v53  ;;  %v2647_v53 = vld [vmem:[%s3905_s2 + $0x10] sm:$0xff]  }
 0x3d8   : > { %v1622_v28 = vpop.f32.mrf.mxu0  ;;  %v1675_v41 = vpop.f32.mrf.mxu1 }
 0x3d9   : > { %v1623_v59 = vadd.f32 %v1622_v28, %v4054_v36  ;;  %v1676_v44 = vadd.f32 %v1675_v41, %v4054_v36  ;;  %v1691_v49 = vmax.f32 %v1621_v23, 0.0  ;;  %v1693_v40 = vmax.f32 %v1674_v29, 0.0  ;;  %v4057_v29 = vld [vmem:[#allocation8_spill] sm:$0xff] }
 0x3da   : > { %v1624_v48 = vpop.f32.mrf.mxu0  ;;  %v1677_v25 = vpop.f32.mrf.mxu1 }
 0x3db   : > { %v1625_v11 = vadd.f32 %v1624_v48, %v4054_v36  ;;  %v1678_v7 = vadd.f32 %v1677_v25, %v4054_v36  ;;  %v1694_v9 = vmax.f32 %v1623_v59, 0.0  ;;  %v1696_v48 = vmax.f32 %v1676_v44, 0.0  ;;  %v4059_v59 = vld [vmem:[#allocation6_spill] sm:$0xff] }
 0x3dc   : > { %v1628_v26 = vpop.f32.mrf.mxu0  ;;  %v1681_v32 = vpop.f32.mrf.mxu1 }
 0x3dd   : > { %v1629_v27 = vadd.f32 %v1628_v26, %v4055_v3  ;;  %v1682_v6 = vadd.f32 %v1681_v32, %v4055_v3  ;;  %v1695_v60 = vmax.f32 %v1625_v11, 0.0  ;;  %v1697_v34 = vmax.f32 %v1678_v7, 0.0 }
 0x3de   : > { %v1630_v57 = vpop.f32.mrf.mxu0  ;;  %v1683_v35 = vpop.f32.mrf.mxu1  ;;  %v1690_v32 = vmax.f32 %v1619_v39, 0.0  ;;  %v2648_v39 = vld [vmem:[%s3905_s2 + $0x18] sm:$0xff]  }
 0x3df   : > { %v1631_v24 = vadd.f32 %v1630_v57, %v4055_v3  ;;  %v1684_v0 = vadd.f32 %v1683_v35, %v4055_v3  ;;  %v1698_v14 = vmax.f32 %v1629_v27, 0.0  ;;  %v1700_v21 = vmax.f32 %v1682_v6, 0.0 }
 0x3e0   : > { %v1632_v31 = vpop.f32.mrf.mxu0  ;;  %v1685_v8 = vpop.f32.mrf.mxu1  ;;  %v1707_v25 = vpack.c.bf16 %v1695_v60, %v1691_v49  ;;  %v1709_v57 = vpack.c.bf16 %v1697_v34, %v1693_v40  ;;  %v1692_v35 = vmax.f32 %v1672_v47, 0.0 }
 0x3e1   : > { %v1633_v30 = vadd.f32 %v1632_v31, %v4056_v62  ;;  %v1686_v43 = vadd.f32 %v1685_v8, %v4056_v62  ;;  %v1699_v56 = vmax.f32 %v1631_v24, 0.0  ;;  %v1701_v13 = vmax.f32 %v1684_v0, 0.0 }
 0x3e2   : > { %v1634_v61 = vpop.f32.mrf.mxu0  ;;  %v1687_v38 = vpop.f32.mrf.mxu1  ;;  %v1706_v31 = vpack.c.bf16 %v1694_v9, %v1690_v32  ;;  %v1708_v63 = vpack.c.bf16 %v1696_v48, %v1692_v35 }
 0x3e3   : > { %v1635_v33 = vadd.f32 %v1634_v61, %v4056_v62  ;;  %v1702_v5 = vmax.f32 %v1633_v30, 0.0  ;;  %v1688_v52 = vadd.f32 %v1687_v38, %v4056_v62  ;;  %v1704_v46 = vmax.f32 %v1686_v43, 0.0 }
 0x3e5   : > { %v1703_v12 = vmax.f32 %v1635_v33, 0.0  ;;  %v1705_v1 = vmax.f32 %v1688_v52, 0.0  ;;  %v1710_v28 = vpack.c.bf16 %v1702_v5, %v1698_v14  ;;  %v1712_v26 = vpack.c.bf16 %v1704_v46, %v1700_v21  ;;  %v4058_v33 = vld [vmem:[#allocation9_spill] sm:$0xff]  ;;  %v4060_v5 = vld [vmem:[#allocation7_spill] sm:$0xff] }
 0x3e7   : > { %v1711_v10 = vpack.c.bf16 %v1703_v12, %v1699_v56  ;;  %v1713_v41 = vpack.c.bf16 %v1705_v1, %v1701_v13 }
 0x3e9   : > { %1726 = vmatprep.subr.bf16.mxu0 %v1711_v10  ;;  %1779 = vmatprep.subr.bf16.mxu1 %v1713_v41 }
 0x3ea   : > { %1727 = vmatpush1.bf16.msra.mxu0 %v1710_v28  ;;  %1780 = vmatpush1.bf16.msra.mxu1 %v1712_v26 }
 0x3eb   : > { %1728 = vmatprep.subr.bf16.mxu0 %v1707_v25  ;;  %1781 = vmatprep.subr.bf16.mxu1 %v1709_v57 }
 0x3ee   : > { %1729 = vmatpush1.bf16.msra.mxu0 %v1706_v31  ;;  %1782 = vmatpush1.bf16.msra.mxu1 %v1708_v63 }
 0x3f1   : > { %2567 = vmatmul.mubr.msk.bf16.vlgmr.msra.gmra.mxu0 %vm456_vm0, %v2647_v53  ;;  %2569 = vmatmul.mubr.msk.bf16.vlgmr.msra.gmra.mxu1 %vm456_vm0, %v2647_v53 }
 0x3f2   : > { %1756 = vmatprep.mubr.bf16.mxu0 %v4051_v37  ;;  %1809 = vmatprep.mubr.bf16.mxu1 %v4051_v37 }
 0x3f9   : > { %2568 = vmatmul.mubr.msk.bf16.gmra.mxu0 %vm456_vm0, %v2648_v39  ;;  %2570 = vmatmul.mubr.msk.bf16.gmra.mxu1 %vm456_vm0, %v2648_v39 }
 0x3fa   : > { %1876 = vmatprep.mubr.bf16.mxu0 %v4051_v37  ;;  %2029 = vmatprep.mubr.bf16.mxu1 %v4051_v37 }
 0x4b1   : > { %v1748_v36 = vpop.f32.mrf.mxu0  ;;  %v1801_v11 = vpop.f32.mrf.mxu1 }
 0x4b2   : > { %v1749_v6 = vadd.f32 %v1748_v36, %v4057_v29  ;;  %v1802_v63 = vadd.f32 %v1801_v11, %v4057_v29 }
 0x4b3   : > { %v1750_v3 = vpop.f32.mrf.mxu0  ;;  %v1803_v24 = vpop.f32.mrf.mxu1 }
 0x4b4   : > { %v1751_v13 = vadd.f32 %v1750_v3, %v4057_v29  ;;  %v1804_v1 = vadd.f32 %v1803_v24, %v4057_v29  ;;  %v2649_v29 = vld [vmem:[%s3905_s2 + $0x20] sm:$0xff]  }
 0x4b5   : > { %v1752_v62 = vpop.f32.mrf.mxu0  ;;  %v1805_v30 = vpop.f32.mrf.mxu1 }
 0x4b6   : > { %v1753_v10 = vadd.f32 %v1752_v62, %v4058_v33  ;;  %v1806_v40 = vadd.f32 %v1805_v30, %v4058_v33  ;;  %v1821_v53 = vmax.f32 %v1751_v13, 0.0  ;;  %v1823_v3 = vmax.f32 %v1804_v1, 0.0 }
 0x4b7   : > { %v1754_v8 = vpop.f32.mrf.mxu0  ;;  %v1807_v7 = vpop.f32.mrf.mxu1 }
 0x4b8   : > { %v1755_v38 = vadd.f32 %v1754_v8, %v4058_v33  ;;  %v1808_v56 = vadd.f32 %v1807_v7, %v4058_v33  ;;  %v1824_v24 = vmax.f32 %v1753_v10, 0.0  ;;  %v1826_v8 = vmax.f32 %v1806_v40, 0.0  ;;  %v2651_v33 = vld [vmem:[%s3905_s2 + $0x30] sm:$0xff]  }
 0x4b9   : > { %v1758_v27 = vpop.f32.mrf.mxu0  ;;  %v1811_v0 = vpop.f32.mrf.mxu1 }
 0x4ba   : > { %v1759_v46 = vadd.f32 %v1758_v27, %v4059_v59  ;;  %v1812_v47 = vadd.f32 %v1811_v0, %v4059_v59  ;;  %v1825_v41 = vmax.f32 %v1755_v38, 0.0  ;;  %v1827_v32 = vmax.f32 %v1808_v56, 0.0  ;;  %v2652_v38 = vld [vmem:[%s3905_s2 + $0x38] sm:$0xff]   ;;  %v2658_v56 = vld [vmem:[%s3905_s2 + $0x68] sm:$0xff]  }
 0x4bb   : > { %v1760_v43 = vpop.f32.mrf.mxu0  ;;  %v1813_v61 = vpop.f32.mrf.mxu1  ;;  %v1820_v0 = vmax.f32 %v1749_v6, 0.0  ;;  %v2650_v6 = vld [vmem:[%s3905_s2 + $0x28] sm:$0xff]  }
 0x4bc   : > { %v1761_v44 = vadd.f32 %v1760_v43, %v4059_v59  ;;  %v1814_v12 = vadd.f32 %v1813_v61, %v4059_v59  ;;  %v1828_v57 = vmax.f32 %v1759_v46, 0.0  ;;  %v1830_v39 = vmax.f32 %v1812_v47, 0.0  ;;  %v2653_v59 = vld [vmem:[%s3905_s2 + $0x40] sm:$0xff]   ;;  %v2659_v46 = vld [vmem:[%s3905_s2 + $0x70] sm:$0xff]   ;;  %v4062_v47 = vld [vmem:[#allocation21_spill] sm:$0xff] }
 0x4bd   : > { %v1762_v23 = vpop.f32.mrf.mxu0  ;;  %v1815_v60 = vpop.f32.mrf.mxu1  ;;  %v1837_v7 = vpack.c.bf16 %v1825_v41, %v1821_v53  ;;  %v1839_v43 = vpack.c.bf16 %v1827_v32, %v1823_v3  ;;  %v1822_v61 = vmax.f32 %v1802_v63, 0.0 }
 0x4be   : > { %v1763_v52 = vadd.f32 %v1762_v23, %v4060_v5  ;;  %v1816_v34 = vadd.f32 %v1815_v60, %v4060_v5  ;;  %v1829_v48 = vmax.f32 %v1761_v44, 0.0  ;;  %v1831_v35 = vmax.f32 %v1814_v12, 0.0  ;;  %v2654_v44 = vld [vmem:[%s3905_s2 + $0x48] sm:$0xff]   ;;  %v2657_v60 = vld [vmem:[%s3905_s2 + $0x60] sm:$0xff]   ;;  %v2660_v12 = vld [vmem:[%s3905_s2 + $0x78] sm:$0xff]  }
 0x4bf   : > { %v1764_v14 = vpop.f32.mrf.mxu0  ;;  %v1817_v21 = vpop.f32.mrf.mxu1  ;;  %v1836_v23 = vpack.c.bf16 %v1824_v24, %v1820_v0  ;;  %v1838_v11 = vpack.c.bf16 %v1826_v8, %v1822_v61 }
 0x4c0   : > { %v1765_v49 = vadd.f32 %v1764_v14, %v4060_v5  ;;  %v1832_v9 = vmax.f32 %v1763_v52, 0.0  ;;  %v1818_v28 = vadd.f32 %v1817_v21, %v4060_v5  ;;  %v1834_v25 = vmax.f32 %v1816_v34, 0.0  ;;  %v2655_v5 = vld [vmem:[%s3905_s2 + $0x50] sm:$0xff]   ;;  %v2656_v52 = vld [vmem:[%s3905_s2 + $0x58] sm:$0xff]  }
 0x4c1   : > { %v4061_v34 = vld [vmem:[#allocation17_spill] sm:$0xff] }
 0x4c2   : > { %v1833_v26 = vmax.f32 %v1765_v49, 0.0  ;;  %v1835_v31 = vmax.f32 %v1818_v28, 0.0  ;;  %v1840_v62 = vpack.c.bf16 %v1832_v9, %v1828_v57  ;;  %v1842_v27 = vpack.c.bf16 %v1834_v25, %v1830_v39  ;;  %v4063_v9 = vld [vmem:[#allocation22_spill] sm:$0xff] }
 0x4c4   : > { %v1841_v36 = vpack.c.bf16 %v1833_v26, %v1829_v48  ;;  %v1843_v30 = vpack.c.bf16 %v1835_v31, %v1831_v35 }
 0x4c6   : > { %1856 = vmatprep.subr.bf16.mxu0 %v1841_v36  ;;  %2009 = vmatprep.subr.bf16.mxu1 %v1843_v30 }
 0x4c7   : > { %1857 = vmatpush1.bf16.msra.mxu0 %v1840_v62  ;;  %2010 = vmatpush1.bf16.msra.mxu1 %v1842_v27 }
 0x4c8   : > { %1858 = vmatprep.subr.bf16.mxu0 %v1837_v7  ;;  %2011 = vmatprep.subr.bf16.mxu1 %v1839_v43 }
 0x4cb   : > { %1859 = vmatpush1.bf16.msra.mxu0 %v1836_v23  ;;  %2012 = vmatpush1.bf16.msra.mxu1 %v1838_v11 }
 0x4ce   : > { %2571 = vmatmul.mubr.msk.bf16.vlgmr.msra.gmra.mxu0 %vm456_vm0, %v2649_v29  ;;  %2583 = vmatmul.mubr.msk.bf16.vlgmr.msra.gmra.mxu1 %vm456_vm0, %v2649_v29 }
 0x4cf   : > { %1886 = vmatprep.mubr.bf16.mxu0 %v4051_v37  ;;  %2039 = vmatprep.mubr.bf16.mxu1 %v4051_v37 }
 0x4d6   : > { %2572 = vmatmul.mubr.msk.bf16.gmra.mxu0 %vm456_vm0, %v2650_v6  ;;  %2584 = vmatmul.mubr.msk.bf16.gmra.mxu1 %vm456_vm0, %v2650_v6 }
 0x4d7   : > { %1896 = vmatprep.mubr.bf16.mxu0 %v4051_v37  ;;  %2049 = vmatprep.mubr.bf16.mxu1 %v4051_v37 }
 0x4de   : > { %2573 = vmatmul.mubr.msk.bf16.gmra.mxu0 %vm456_vm0, %v2651_v33  ;;  %2585 = vmatmul.mubr.msk.bf16.gmra.mxu1 %vm456_vm0, %v2651_v33 }
 0x4df   : > { %1906 = vmatprep.mubr.bf16.mxu0 %v4051_v37  ;;  %2059 = vmatprep.mubr.bf16.mxu1 %v4051_v37 }
 0x4e6   : > { %2574 = vmatmul.mubr.msk.bf16.gmra.mxu0 %vm456_vm0, %v2652_v38  ;;  %2586 = vmatmul.mubr.msk.bf16.gmra.mxu1 %vm456_vm0, %v2652_v38  ;;  %v4068_v38 = vld [vmem:[#allocation20_spill] sm:$0xff] }
 0x4e7   : > { %1916 = vmatprep.mubr.bf16.mxu0 %v4051_v37  ;;  %2069 = vmatprep.mubr.bf16.mxu1 %v4051_v37 }
 0x4ee   : > { %2575 = vmatmul.mubr.msk.bf16.gmra.mxu0 %vm456_vm0, %v2653_v59  ;;  %2587 = vmatmul.mubr.msk.bf16.gmra.mxu1 %vm456_vm0, %v2653_v59 }
 0x4ef   : > { %1926 = vmatprep.mubr.bf16.mxu0 %v4051_v37  ;;  %2079 = vmatprep.mubr.bf16.mxu1 %v4051_v37 }
 0x4f6   : > { %2576 = vmatmul.mubr.msk.bf16.gmra.mxu0 %vm456_vm0, %v2654_v44  ;;  %2588 = vmatmul.mubr.msk.bf16.gmra.mxu1 %vm456_vm0, %v2654_v44 }
 0x4f7   : > { %1936 = vmatprep.mubr.bf16.mxu0 %v4051_v37  ;;  %2089 = vmatprep.mubr.bf16.mxu1 %v4051_v37 }
 0x4fe   : > { %2577 = vmatmul.mubr.msk.bf16.gmra.mxu0 %vm456_vm0, %v2655_v5  ;;  %2589 = vmatmul.mubr.msk.bf16.gmra.mxu1 %vm456_vm0, %v2655_v5 }
 0x4ff   : > { %1946 = vmatprep.mubr.bf16.mxu0 %v4051_v37  ;;  %2099 = vmatprep.mubr.bf16.mxu1 %v4051_v37 }
 0x506   : > { %2578 = vmatmul.mubr.msk.bf16.gmra.mxu0 %vm456_vm0, %v2656_v52  ;;  %2590 = vmatmul.mubr.msk.bf16.gmra.mxu1 %vm456_vm0, %v2656_v52 }
 0x507   : > { %1956 = vmatprep.mubr.bf16.mxu0 %v4051_v37  ;;  %2109 = vmatprep.mubr.bf16.mxu1 %v4051_v37 }
 0x50e   : > { %2579 = vmatmul.mubr.msk.bf16.gmra.mxu0 %vm456_vm0, %v2657_v60  ;;  %2591 = vmatmul.mubr.msk.bf16.gmra.mxu1 %vm456_vm0, %v2657_v60 }
 0x50f   : > { %1966 = vmatprep.mubr.bf16.mxu0 %v4051_v37  ;;  %2119 = vmatprep.mubr.bf16.mxu1 %v4051_v37 }
 0x516   : > { %2580 = vmatmul.mubr.msk.bf16.gmra.mxu0 %vm456_vm0, %v2658_v56  ;;  %2592 = vmatmul.mubr.msk.bf16.gmra.mxu1 %vm456_vm0, %v2658_v56 }
 0x517   : > { %1976 = vmatprep.mubr.bf16.mxu0 %v4051_v37  ;;  %2129 = vmatprep.mubr.bf16.mxu1 %v4051_v37 }
 0x51e   : > { %2581 = vmatmul.mubr.msk.bf16.gmra.mxu0 %vm456_vm0, %v2659_v46  ;;  %2593 = vmatmul.mubr.msk.bf16.gmra.mxu1 %vm456_vm0, %v2659_v46 }
 0x51f   : > { %1986 = vmatprep.mubr.bf16.mxu0 %v4051_v37  ;;  %2139 = vmatprep.mubr.bf16.mxu1 %v4051_v37 }
 0x526   : > { %2582 = vmatmul.mubr.msk.bf16.gmra.mxu0 %vm456_vm0, %v2660_v12  ;;  %2594 = vmatmul.mubr.msk.bf16.gmra.mxu1 %vm456_vm0, %v2660_v12 }
 0x527   : > { %2595 = vmatprep.mubr.msk.bf16.mxu0 %vm1440_vm1, %v4061_v34  ;;  %2596 = vmatprep.mubr.msk.bf16.mxu1 %vm1440_vm1, %v4061_v34 }
 0x58e   : > { %v1878_v14 = vpop.f32.mrf.mxu0  ;;  %v2031_v13 = vpop.f32.mrf.mxu1 }
 0x58f   : > { %v1879_v49 = vadd.f32 %v1878_v14, %v4062_v47  ;;  %v2032_v21 = vadd.f32 %v2031_v13, %v4062_v47 }
 0x590   : > { %v1880_v1 = vpop.f32.mrf.mxu0  ;;  %v2033_v37 = vpop.f32.mrf.mxu1 }
 0x591   : > { %v1881_v40 = vadd.f32 %v1880_v1, %v4062_v47  ;;  %v2034_v48 = vadd.f32 %v2033_v37, %v4062_v47  ;;  %v2150_v32 = vmax.f32 %v1879_v49, 0.0  ;;  %v2152_v63 = vmax.f32 %v2032_v21, 0.0 }
 0x592   : > { %v1882_v10 = vpop.f32.mrf.mxu0  ;;  %v2035_v41 = vpop.f32.mrf.mxu1 }
 0x593   : > { %v1883_v28 = vadd.f32 %v1882_v10, %v4063_v9  ;;  %v2036_v25 = vadd.f32 %v2035_v41, %v4063_v9  ;;  %v2151_v3 = vmax.f32 %v1881_v40, 0.0  ;;  %v2153_v8 = vmax.f32 %v2034_v48, 0.0 }
 0x594   : > { %v1884_v26 = vpop.f32.mrf.mxu0  ;;  %v2037_v31 = vpop.f32.mrf.mxu1 }
 0x595   : > { %v2154_v57 = vmax.f32 %v1883_v28, 0.0  ;;  %v1885_v35 = vadd.f32 %v1884_v26, %v4063_v9  ;;  %v2156_v53 = vmax.f32 %v2036_v25, 0.0  ;;  %v2038_v39 = vadd.f32 %v2037_v31, %v4063_v9 }
 0x596   : > { %v1888_v36 = vpop.f32.mrf.mxu0  ;;  %v2041_v30 = vpop.f32.mrf.mxu1 }
 0x597   : > { %v3593_v24 = vpack.c.bf16 %v2154_v57, %v2150_v32  ;;  %v2155_v62 = vmax.f32 %v1885_v35, 0.0  ;;  %v3595_v7 = vpack.c.bf16 %v2156_v53, %v2152_v63  ;;  %v2157_v27 = vmax.f32 %v2038_v39, 0.0 }
 0x598   : > { %v1890_v0 = vpop.f32.mrf.mxu0  ;;  %v1889_v61 = vadd.f32 %v1888_v36, %v4029_v42  ;;  %v2043_v23 = vpop.f32.mrf.mxu1  ;;  %v2042_v29 = vadd.f32 %v2041_v30, %v4029_v42 }
 0x599   : > { %4064 = vst [vmem:[#allocation19_spill] sm:$0xff] %v3593_v24  ;;  %4065 = vst [vmem:[#allocation25_spill] sm:$0xff] %v3595_v7  ;;  %v3597_v43 = vpack.c.bf16 %v2155_v62, %v2151_v3  ;;  %v3600_v11 = vpack.c.bf16 %v2157_v27, %v2153_v8  ;;  %v1891_v33 = vadd.f32 %v1890_v0, %v4029_v42 }
 0x59a   : > { %v1892_v6 = vpop.f32.mrf.mxu0  ;;  %v2045_v44 = vpop.f32.mrf.mxu1  ;;  %v2044_v5 = vadd.f32 %v2043_v23, %v4029_v42  ;;  %v2158_v56 = vmax.f32 %v1889_v61, 0.0  ;;  %v2160_v14 = vmax.f32 %v2042_v29, 0.0 }
 0x59b   : > { %4066 = vst [vmem:[#allocation28_spill] sm:$0xff] %v3597_v43  ;;  %4067 = vst [vmem:[#allocation40_spill] sm:$0xff] %v3600_v11  ;;  %v1893_v59 = vadd.f32 %v1892_v6, %v4068_v38  ;;  %v2046_v52 = vadd.f32 %v2045_v44, %v4068_v38  ;;  %v2159_v49 = vmax.f32 %v1891_v33, 0.0 }
 0x59c   : > { %v1894_v60 = vpop.f32.mrf.mxu0  ;;  %v2047_v34 = vpop.f32.mrf.mxu1  ;;  %v2161_v42 = vmax.f32 %v2044_v5, 0.0 }
 0x59d   : > { %v2162_v46 = vmax.f32 %v1893_v59, 0.0  ;;  %v1895_v12 = vadd.f32 %v1894_v60, %v4068_v38  ;;  %v2164_v13 = vmax.f32 %v2046_v52, 0.0  ;;  %v2048_v1 = vadd.f32 %v2047_v34, %v4068_v38 }
 0x59e   : > { %v3609_v47 = vpop.f32.mrf.mxu0  ;;  %v3613_v10 = vpop.f32.mrf.mxu1 }
 0x59f   : > { %4069 = vst [vmem:[#allocation38_spill] sm:$0xff] %v3609_v47  ;;  %v3611_v37 = vpack.c.bf16 %v2162_v46, %v2158_v56  ;;  %v2163_v21 = vmax.f32 %v1895_v12, 0.0  ;;  %4071 = vst [vmem:[#allocation39_spill] sm:$0xff] %v3613_v10  ;;  %v3615_v40 = vpack.c.bf16 %v2164_v13, %v2160_v14  ;;  %v2165_v9 = vmax.f32 %v2048_v1, 0.0 }
 0x5a0   : > { %v1900_v28 = vpop.f32.mrf.mxu0  ;;  %v2053_v48 = vpop.f32.mrf.mxu1 }
 0x5a1   : > { %4070 = vst [vmem:[#allocation41_spill] sm:$0xff] %v3611_v37  ;;  %4072 = vst [vmem:[#allocation35_spill] sm:$0xff] %v3615_v40  ;;  %v3617_v41 = vpack.c.bf16 %v2163_v21, %v2159_v49  ;;  %v3619_v25 = vpack.c.bf16 %v2165_v9, %v2161_v42  ;;  %v3646_v9 = vadd.f32 %v1900_v28, %v4025_v45 }
 0x5a2   : > { %v3621_v26 = vpop.f32.mrf.mxu0  ;;  %v3623_v32 = vpop.f32.mrf.mxu1  ;;  %v3649_v54 = vadd.f32 %v2053_v48, %v4025_v45 }
 0x5a3   : > { %4073 = vst [vmem:[#allocation36_spill] sm:$0xff] %v3617_v41  ;;  %4074 = vst [vmem:[#allocation37_spill] sm:$0xff] %v3619_v25  ;;  %v4082_v25 = vld [vmem:[#allocation15_spill] sm:$0xff]  ;;  %v4083_v41 = vld [vmem:[#allocation12_spill] sm:$0xff] }
 0x5a4   : > { %4075 = vst [vmem:[#allocation33_spill] sm:$0xff] %v3623_v32  ;;  %v1904_v57 = vpop.f32.mrf.mxu0  ;;  %v2057_v35 = vpop.f32.mrf.mxu1  ;;  %4076 = vst [vmem:[#allocation34_spill] sm:$0xff] %v3646_v9 }
 0x5a5   : > { %4077 = vst [vmem:[#allocation27_spill] sm:$0xff] %v3649_v54  ;;  %v3652_v24 = vadd.f32 %v1904_v57, %v3046_v22  ;;  %v3655_v11 = vadd.f32 %v2057_v35, %v3046_v22 }
 0x5a6   : > { %v3625_v31 = vpop.f32.mrf.mxu0  ;;  %v3627_v63 = vpop.f32.mrf.mxu1 }
 0x5a7   : > { %4078 = vst [vmem:[#allocation29_spill] sm:$0xff] %v3652_v24  ;;  %4079 = vst [vmem:[#allocation23_spill] sm:$0xff] %v3655_v11 }
 0x5a8   : > { %v1910_v53 = vpop.f32.mrf.mxu0  ;;  %v2063_v39 = vpop.f32.mrf.mxu1 }
 0x5a9   : > { %v3658_v43 = vadd.f32 %v1910_v53, %v3027_v17  ;;  %v3661_v40 = vadd.f32 %v2063_v39, %v3027_v17 }
 0x5aa   : > { %v3629_v36 = vpop.f32.mrf.mxu0  ;;  %v3631_v3 = vpop.f32.mrf.mxu1 }
 0x5ab   : > { %4080 = vst [vmem:[#allocation24_spill] sm:$0xff] %v3661_v40 }
 0x5ac   : > { %v1914_v62 = vpop.f32.mrf.mxu0  ;;  %v2067_v30 = vpop.f32.mrf.mxu1 }
 0x5ad   : > { %v3664_v28 = vadd.f32 %v1914_v62, %v3029_v18  ;;  %v3667_v48 = vadd.f32 %v2067_v30, %v3029_v18 }
 0x5ae   : > { %v3633_v8 = vpop.f32.mrf.mxu0  ;;  %v3635_v27 = vpop.f32.mrf.mxu1 }
 0x5b0   : > { %v1920_v0 = vpop.f32.mrf.mxu0  ;;  %v2073_v61 = vpop.f32.mrf.mxu1 }
 0x5b1   : > { %v3670_v19 = vadd.f32 %v1920_v0, %v3023_v15  ;;  %v3673_v57 = vadd.f32 %v2073_v61, %v3023_v15 }
 0x5b2   : > { %v3637_v23 = vpop.f32.mrf.mxu0  ;;  %v3639_v29 = vpop.f32.mrf.mxu1 }
 0x5b4   : > { %v1924_v6 = vpop.f32.mrf.mxu0  ;;  %v2077_v33 = vpop.f32.mrf.mxu1 }
 0x5b5   : > { %v3676_v53 = vadd.f32 %v1924_v6, %v3025_v16  ;;  %v3679_v39 = vadd.f32 %v2077_v33, %v3025_v16 }
 0x5b6   : > { %v3641_v38 = vpop.f32.mrf.mxu0  ;;  %v3643_v59 = vpop.f32.mrf.mxu1 }
 0x5b8   : > { %v1930_v44 = vpop.f32.mrf.mxu0  ;;  %v2083_v5 = vpop.f32.mrf.mxu1 }
 0x5b9   : > { %v3682_v51 = vadd.f32 %v1930_v44, %v4081_v4  ;;  %v3685_v62 = vadd.f32 %v2083_v5, %v4081_v4 }
 0x5ba   : > { %v1932_v52 = vpop.f32.mrf.mxu0  ;;  %v2085_v60 = vpop.f32.mrf.mxu1 }
 0x5bb   : > { %v3688_v0 = vadd.f32 %v1932_v52, %v4082_v25  ;;  %v3691_v61 = vadd.f32 %v2085_v60, %v4082_v25 }
 0x5bc   : > { %v1934_v56 = vpop.f32.mrf.mxu0  ;;  %v2087_v46 = vpop.f32.mrf.mxu1 }
 0x5bd   : > { %v3694_v50 = vadd.f32 %v1934_v56, %v4082_v25  ;;  %v3697_v6 = vadd.f32 %v2087_v46, %v4082_v25 }
 0x5be   : > { %v1938_v12 = vpop.f32.mrf.mxu0  ;;  %v2091_v34 = vpop.f32.mrf.mxu1 }
 0x5bf   : > { %v3700_v44 = vadd.f32 %v1938_v12, %v4083_v41 }
 0x5c0   : > { %v1940_v14 = vpop.f32.mrf.mxu0  ;;  %v2093_v13 = vpop.f32.mrf.mxu1 }
 0x5c1   : > { %v1941_v10 = vadd.f32 %v1940_v14, %v4083_v41  ;;  %v2094_v12 = vadd.f32 %v2093_v13, %v4083_v41 }
 0x5c2   : > { %v1942_v1 = vpop.f32.mrf.mxu0  ;;  %v2095_v49 = vpop.f32.mrf.mxu1 }
 0x5c4   : > { %v1944_v21 = vpop.f32.mrf.mxu0  ;;  %v2097_v42 = vpop.f32.mrf.mxu1 }
 0x5c5   : > { %v1945_v5 = vadd.f32 %v1944_v21, %v4084_v2  ;;  %v2098_v60 = vadd.f32 %v2097_v42, %v4084_v2  ;;  %v2096_v42 = vadd.f32 %v2095_v49, %v4084_v2 }
 0x5c6   : > { %v1948_v7 = vpop.f32.mrf.mxu0  ;;  %v2101_v37 = vpop.f32.mrf.mxu1 }
 0x5c7   : > { %v1949_v9 = vadd.f32 %v1948_v7, %v4085_v58  ;;  %v2102_v21 = vadd.f32 %v2101_v37, %v4085_v58  ;;  %v2205_v13 = vmax.f32 %v2098_v60, 0.0  ;;  %v2195_v60 = vmax.f32 %v3694_v50, 0.0 }
 0x5c8   : > { %v1950_v35 = vpop.f32.mrf.mxu0  ;;  %v2103_v30 = vpop.f32.mrf.mxu1  ;;  %v1923_v50 = vadd.f32 %v3637_v23, %v3025_v16 }
 0x5c9   : > { %v1951_v55 = vadd.f32 %v1950_v35, %v4085_v58  ;;  %v2104_v56 = vadd.f32 %v2103_v30, %v4085_v58  ;;  %v2206_v58 = vmax.f32 %v1949_v9, 0.0  ;;  %v2208_v49 = vmax.f32 %v2102_v21, 0.0 }
 0x5ca   : > { %v1952_v33 = vpop.f32.mrf.mxu0  ;;  %v2105_v54 = vpop.f32.mrf.mxu1  ;;  %v2204_v9 = vmax.f32 %v2096_v42, 0.0 }
 0x5cb   : > { %v1953_v52 = vadd.f32 %v1952_v33, %v4086_v20  ;;  %v2106_v25 = vadd.f32 %v2105_v54, %v4086_v20  ;;  %v1943_v33 = vadd.f32 %v1942_v1, %v4084_v2  ;;  %v2203_v54 = vmax.f32 %v1945_v5, 0.0 }
 0x5cc   : > { %v1954_v46 = vpop.f32.mrf.mxu0  ;;  %v2107_v11 = vpop.f32.mrf.mxu1  ;;  %v2207_v45 = vmax.f32 %v1951_v55, 0.0  ;;  %v2209_v37 = vmax.f32 %v2104_v56, 0.0  ;;  %v2092_v1 = vadd.f32 %v2091_v34, %v4083_v41  ;;  %v2199_v2 = vmax.f32 %v1941_v10, 0.0 }
 0x5cd   : > { %v1955_v35 = vadd.f32 %v1954_v46, %v4086_v20  ;;  %v2210_v47 = vmax.f32 %v1953_v52, 0.0  ;;  %v2108_v7 = vadd.f32 %v2107_v11, %v4086_v20  ;;  %v2212_v24 = vmax.f32 %v2106_v25, 0.0 }
 0x5ce   : > { %v3716_v30 = vpop.f32.mrf.mxu0  ;;  %v3718_v40 = vpop.f32.mrf.mxu1  ;;  %v2201_v11 = vmax.f32 %v2094_v12, 0.0  ;;  %v2202_v5 = vmax.f32 %v1943_v33, 0.0  ;;  %v2271_v56 = vpack.c.bf16 %v2203_v54, %v2199_v2  ;;  %v1929_v10 = vadd.f32 %v3641_v38, %v4081_v4 }
 0x5cf   : > { %v2211_v14 = vmax.f32 %v1955_v35, 0.0  ;;  %4087 = vst [vmem:[#allocation43_spill] sm:$0xff] %v3718_v40  ;;  %v2213_v46 = vmax.f32 %v2108_v7, 0.0  ;;  %v2274_v55 = vpack.c.bf16 %v2210_v47, %v2206_v58  ;;  %v2276_v7 = vpack.c.bf16 %v2212_v24, %v2208_v49 }
 0x5d0   : > { %v3720_v32 = vpop.f32.mrf.mxu0  ;;  %v3723_v20 = vpop.f32.mrf.mxu1  ;;  %v2198_v41 = vmax.f32 %v3700_v44, 0.0  ;;  %v2273_v34 = vpack.c.bf16 %v2205_v13, %v2201_v11  ;;  %v2082_v24 = vadd.f32 %v3643_v59, %v4081_v4  ;;  %v2191_v12 = vmax.f32 %v3682_v51, 0.0 }
 0x5d1   : > { %v2275_v52 = vpack.c.bf16 %v2211_v14, %v2207_v45  ;;  %v2277_v25 = vpack.c.bf16 %v2213_v46, %v2209_v37  ;;  %v2197_v45 = vmax.f32 %v3697_v6, 0.0  ;;  %v2200_v21 = vmax.f32 %v2092_v1, 0.0 }
 0x5d2   : > { %v3725_v35 = vpop.f32.mrf.mxu0  ;;  %v3728_v40 = vpop.f32.mrf.mxu1  ;;  %v2076_v38 = vadd.f32 %v3639_v29, %v3025_v16  ;;  %v2193_v6 = vmax.f32 %v3685_v62, 0.0  ;;  %v2194_v44 = vmax.f32 %v3688_v0, 0.0  ;;  %v2270_v42 = vpack.c.bf16 %v2202_v5, %v2198_v41 }
 0x5d3   : > { %2294 = vmatprep.subr.bf16.mxu0 %v2275_v52  ;;  %2335 = vmatprep.subr.bf16.mxu1 %v2277_v25  ;;  %v2187_v4 = vmax.f32 %v3676_v53, 0.0  ;;  %v2196_v51 = vmax.f32 %v3691_v61, 0.0  ;;  %v2267_v59 = vpack.c.bf16 %v2195_v60, %v2191_v12  ;;  %v2272_v54 = vpack.c.bf16 %v2204_v9, %v2200_v21  ;;  %v4092_v12 = vld [vmem:[#allocation38_spill] sm:$0xff] }
 0x5d4   : > { %v3734_v47 = vpop.f32.mrf.mxu0  ;;  %2295 = vmatpush1.bf16.msra.mxu0 %v2274_v55  ;;  %v3741_v33 = vpop.f32.mrf.mxu1  ;;  %2336 = vmatpush1.bf16.msra.mxu1 %v2276_v7  ;;  %v1919_v13 = vadd.f32 %v3633_v8, %v3023_v15  ;;  %v2189_v16 = vmax.f32 %v3679_v39, 0.0  ;;  %v2190_v29 = vmax.f32 %v1929_v10, 0.0  ;;  %v2269_v62 = vpack.c.bf16 %v2197_v45, %v2193_v6 }
 0x5d5   : > { %2296 = vmatprep.subr.bf16.mxu0 %v2271_v56  ;;  %2337 = vmatprep.subr.bf16.mxu1 %v2273_v34  ;;  %v1913_v58 = vadd.f32 %v3629_v36, %v3029_v18  ;;  %v2072_v53 = vadd.f32 %v3635_v27, %v3023_v15  ;;  %v2183_v61 = vmax.f32 %v3670_v19, 0.0  ;;  %v2192_v37 = vmax.f32 %v2082_v24, 0.0  ;;  %v4089_v56 = vld [vmem:[#allocation24_spill] sm:$0xff]  ;;  %v4090_v34 = vld [vmem:[#allocation29_spill] sm:$0xff] }
 0x5d6   : > { %v3747_v23 = vpop.f32.mrf.mxu0  ;;  %v3751_v14 = vpop.f32.mrf.mxu1  ;;  %v2066_v8 = vadd.f32 %v3631_v3, %v3029_v18  ;;  %v2185_v39 = vmax.f32 %v3673_v57, 0.0  ;;  %v2186_v1 = vmax.f32 %v1923_v50, 0.0  ;;  %v2266_v2 = vpack.c.bf16 %v2194_v44, %v2190_v29  ;;  %v4096_v29 = vld [vmem:[#allocation27_spill] sm:$0xff] }
 0x5d7   : > { %v2179_v36 = vmax.f32 %v3664_v28, 0.0  ;;  %v2188_v15 = vmax.f32 %v2076_v38, 0.0  ;;  %v2263_v27 = vpack.c.bf16 %v2187_v4, %v2183_v61  ;;  %v2268_v19 = vpack.c.bf16 %v2196_v51, %v2192_v37  ;;  %v4093_v38 = vld [vmem:[#allocation23_spill] sm:$0xff] }
 0x5d8   : > { %v3756_v0 = vpop.f32.mrf.mxu0  ;;  %2297 = vmatpush1.bf16.msra.mxu0 %v2270_v42  ;;  %v3763_v46 = vpop.f32.mrf.mxu1  ;;  %2338 = vmatpush1.bf16.msra.mxu1 %v2272_v54  ;;  %v1909_v11 = vadd.f32 %v3625_v31, %v3027_v17  ;;  %v2181_v5 = vmax.f32 %v3667_v48, 0.0  ;;  %v2182_v18 = vmax.f32 %v1919_v13, 0.0  ;;  %v2265_v3 = vpack.c.bf16 %v2189_v16, %v2185_v39  ;;  %v4088_v31 = vld [vmem:[#allocation33_spill] sm:$0xff]  ;;  %v4094_v4 = vld [vmem:[#allocation39_spill] sm:$0xff] }
 0x5d9   : > { %2298 = vmatprep.subr.bf16.mxu0 %v2267_v59  ;;  %2339 = vmatprep.subr.bf16.mxu1 %v2269_v62  ;;  %v1903_v55 = vadd.f32 %v3621_v26, %v3046_v22  ;;  %v2062_v28 = vadd.f32 %v3627_v63, %v3027_v17  ;;  %v2175_v25 = vmax.f32 %v3658_v43, 0.0  ;;  %v2184_v60 = vmax.f32 %v2072_v53, 0.0  ;;  %v4091_v43 = vld [vmem:[#allocation18_spill] sm:$0xff] }
 0x5da   : > { %v3768_v49 = vpop.f32.mrf.mxu0  ;;  %v3771_v52 = vpop.f32.mrf.mxu1  ;;  %v2056_v48 = vadd.f32 %v4088_v31, %v3046_v22  ;;  %v2177_v7 = vmax.f32 %v4089_v56, 0.0  ;;  %v2178_v10 = vmax.f32 %v1913_v58, 0.0  ;;  %v2262_v45 = vpack.c.bf16 %v2186_v1, %v2182_v18  ;;  %v4095_v59 = vld [vmem:[#allocation34_spill] sm:$0xff] }
 0x5db   : > { %v2171_v26 = vmax.f32 %v4090_v34, 0.0  ;;  %v2180_v50 = vmax.f32 %v2066_v8, 0.0  ;;  %v2259_v24 = vpack.c.bf16 %v2179_v36, %v2175_v25  ;;  %v2264_v17 = vpack.c.bf16 %v2188_v15, %v2184_v60  ;;  %v4098_v60 = vld [vmem:[#allocation26_spill] sm:$0xff]  ;;  %v4101_v34 = vld [vmem:[#allocation36_spill] sm:$0xff] }
 0x5dc   : > { %v3776_v57 = vpop.f32.mrf.mxu0  ;;  %2299 = vmatpush1.bf16.msra.mxu0 %v2266_v2  ;;  %v2127_v9 = vpop.f32.mrf.mxu1  ;;  %2340 = vmatpush1.bf16.msra.mxu1 %v2268_v19  ;;  %v1899_v21 = vadd.f32 %v4092_v12, %v4091_v43  ;;  %v2173_v6 = vmax.f32 %v4093_v38, 0.0  ;;  %v2174_v44 = vmax.f32 %v1909_v11, 0.0  ;;  %v2261_v22 = vpack.c.bf16 %v2181_v5, %v2177_v7  ;;  %v4099_v7 = vld [vmem:[#allocation30_spill] sm:$0xff]  ;;  %v4106_v38 = vld [vmem:[#allocation45_spill] sm:$0xff] }
 0x5dd   : > { %2300 = vmatprep.subr.bf16.mxu0 %v2263_v27  ;;  %2341 = vmatprep.subr.bf16.mxu1 %v2265_v3  ;;  %v2052_v51 = vadd.f32 %v4094_v4, %v4091_v43  ;;  %v2167_v54 = vmax.f32 %v4095_v59, 0.0  ;;  %v2176_v13 = vmax.f32 %v2062_v28, 0.0  ;;  %v2169_v62 = vmax.f32 %v4096_v29, 0.0  ;;  %v4104_v43 = vld [vmem:[#allocation47_spill] sm:$0xff] }
 0x5de   : > { %v1978_v41 = vpop.f32.mrf.mxu0  ;;  %v3787_v63 = vpop.f32.mrf.mxu1  ;;  %v2170_v58 = vmax.f32 %v1903_v55, 0.0  ;;  %v2258_v53 = vpack.c.bf16 %v2178_v10, %v2174_v44  ;;  %v2172_v37 = vmax.f32 %v2056_v48, 0.0  ;;  %v2166_v2 = vmax.f32 %v1899_v21, 0.0  ;;  %v4097_v55 = vld [vmem:[#allocation31_spill] sm:$0xff]  ;;  %v4105_v21 = vld [vmem:[#allocation44_spill] sm:$0xff] }
 0x5df   : > { %v2255_v8 = vpack.c.bf16 %v2171_v26, %v2167_v54  ;;  %v2260_v39 = vpack.c.bf16 %v2180_v50, %v2176_v13  ;;  %v2257_v36 = vpack.c.bf16 %v2173_v6, %v2169_v62  ;;  %v2168_v27 = vmax.f32 %v2052_v51, 0.0  ;;  %v4107_v51 = vld [vmem:[#allocation41_spill] sm:$0xff]  ;;  %v4108_v29 = vld [vmem:[#allocation35_spill] sm:$0xff]  ;;  %v4109_v62 = vld [vmem:[#allocation28_spill] sm:$0xff] }
 0x5e0   : > { %v1980_v42 = vpop.f32.mrf.mxu0  ;;  %2301 = vmatpush1.bf16.msra.mxu0 %v2262_v45  ;;  %v2133_v16 = vpop.f32.mrf.mxu1  ;;  %2342 = vmatpush1.bf16.msra.mxu1 %v2264_v17  ;;  %v2254_v11 = vpack.c.bf16 %v2170_v58, %v2166_v2  ;;  %v3798_v28 = vadd.f32 %v3720_v32, %v4097_v55  ;;  %v3802_v25 = vadd.f32 %v3723_v20, %v4097_v55  ;;  %v4100_v20 = vld [vmem:[#allocation32_spill] sm:$0xff] }
 0x5e1   : > { %2302 = vmatprep.subr.bf16.mxu0 %v2259_v24  ;;  %2343 = vmatprep.subr.bf16.mxu1 %v2261_v22  ;;  %v2256_v18 = vpack.c.bf16 %v2172_v37, %v2168_v27  ;;  %v3806_v31 = vadd.f32 %v3734_v47, %v4098_v60  ;;  %v3810_v48 = vadd.f32 %v3741_v33, %v4098_v60 }
 0x5e2   : > { %v1982_v61 = vpop.f32.mrf.mxu0  ;;  %v2135_v1 = vpop.f32.mrf.mxu1  ;;  %v3814_v10 = vadd.f32 %v3756_v0, %v4099_v7  ;;  %v3818_v32 = vadd.f32 %v3763_v46, %v4099_v7  ;;  %v3822_v45 = vadd.f32 %v3768_v49, %v4100_v20  ;;  %v3827_v33 = vadd.f32 %v3771_v52, %v4100_v20  ;;  %v4102_v46 = vld [vmem:[#allocation46_spill] sm:$0xff]  ;;  %v4103_v49 = vld [vmem:[#allocation37_spill] sm:$0xff] }
 0x5e3   : > { %v3831_v0 = vadd.f32 %v3776_v57, %v4100_v20  ;;  %v3834_v26 = vadd.f32 %v2127_v9, %v4100_v20  ;;  %v3837_v50 = vadd.f32 %v1978_v41, %v4102_v46  ;;  %v1981_v17 = vadd.f32 %v1980_v42, %v4102_v46  ;;  %v4112_v20 = vld [vmem:[#allocation25_spill] sm:$0xff] }
 0x5e4   : > { %v1984_v15 = vpop.f32.mrf.mxu0  ;;  %2303 = vmatpush1.bf16.msra.mxu0 %v2258_v53  ;;  %v2137_v19 = vpop.f32.mrf.mxu1  ;;  %2344 = vmatpush1.bf16.msra.mxu1 %v2260_v39  ;;  %v2134_v42 = vadd.f32 %v2133_v16, %v4102_v46  ;;  %v1983_v58 = vadd.f32 %v1982_v61, %v4104_v43  ;;  %v2136_v53 = vadd.f32 %v2135_v1, %v4104_v43  ;;  %v4110_v39 = vld [vmem:[#allocation40_spill] sm:$0xff] }
 0x5e5   : > { %2304 = vmatprep.subr.bf16.mxu0 %v2255_v8  ;;  %2345 = vmatprep.subr.bf16.mxu1 %v2257_v36  ;;  %v1985_v12 = vadd.f32 %v1984_v15, %v4104_v43  ;;  %v2138_v57 = vadd.f32 %v2137_v19, %v4104_v43  ;;  %v2132_v61 = vadd.f32 %v3787_v63, %v4102_v46  ;;  %v2227_v43 = vmax.f32 %v3831_v0, 0.0 }
 0x5e6   : > { %v1988_v5 = vpop.f32.mrf.mxu0  ;;  %v2141_v3 = vpop.f32.mrf.mxu1  ;;  %v2229_v63 = vmax.f32 %v3834_v26, 0.0  ;;  %v2230_v46 = vmax.f32 %v3837_v50, 0.0  ;;  %v2122_v0 = vadd.f32 %v3751_v14, %v4099_v7  ;;  %v2225_v26 = vmax.f32 %v3818_v32, 0.0 }
 0x5e7   : > { %v1989_v9 = vadd.f32 %v1988_v5, %v4105_v21  ;;  %v2142_v59 = vadd.f32 %v2141_v3, %v4105_v21  ;;  %v2235_v2 = vmax.f32 %v1985_v12, 0.0  ;;  %v2237_v27 = vmax.f32 %v2138_v57, 0.0 }
 0x5e8   : > { %v1990_v56 = vpop.f32.mrf.mxu0  ;;  %2305 = vmatpush1.bf16.msra.mxu0 %v2254_v11  ;;  %v2143_v47 = vpop.f32.mrf.mxu1  ;;  %2346 = vmatpush1.bf16.msra.mxu1 %v2256_v18  ;;  %v4111_v18 = vld [vmem:[#allocation19_spill] sm:$0xff]  ;;  %v2231_v3 = vmax.f32 %v1981_v17, 0.0  ;;  %v2236_v12 = vmax.f32 %v2136_v53, 0.0  ;;  %v2232_v57 = vmax.f32 %v2132_v61, 0.0  ;;  %v2226_v50 = vmax.f32 %v3822_v45, 0.0 }
 0x5e9   : > { %2306 = vmatprep.subr.bf16.mxu0 %v4101_v34  ;;  %2347 = vmatprep.subr.bf16.mxu1 %v4103_v49  ;;  %v1991_v52 = vadd.f32 %v1990_v56, %v4105_v21  ;;  %v2144_v22 = vadd.f32 %v2143_v47, %v4105_v21  ;;  %v2238_v19 = vmax.f32 %v1989_v9, 0.0  ;;  %v2240_v1 = vmax.f32 %v2142_v59, 0.0 }
 0x5ea   : > { %v1992_v24 = vpop.f32.mrf.mxu0  ;;  %v2145_v44 = vpop.f32.mrf.mxu1  ;;  %v2233_v47 = vmax.f32 %v2134_v42, 0.0  ;;  %v2234_v34 = vmax.f32 %v1983_v58, 0.0  ;;  %v2287_v21 = vpack.c.bf16 %v2235_v2, %v2231_v3  ;;  %v2288_v14 = vpack.c.bf16 %v2236_v12, %v2232_v57 }
 0x5eb   : > { %v1993_v6 = vadd.f32 %v1992_v24, %v4106_v38  ;;  %v2146_v41 = vadd.f32 %v2145_v44, %v4106_v38  ;;  %v2239_v16 = vmax.f32 %v1991_v52, 0.0  ;;  %v2241_v11 = vmax.f32 %v2144_v22, 0.0 }
 0x5ec   : > { %v1994_v4 = vpop.f32.mrf.mxu0  ;;  %2307 = vmatpush1.bf16.msra.mxu0 %v4107_v51  ;;  %v2147_v13 = vpop.f32.mrf.mxu1  ;;  %2348 = vmatpush1.bf16.msra.mxu1 %v4108_v29  ;;  %v2289_v17 = vpack.c.bf16 %v2237_v27, %v2233_v47  ;;  %v2223_v44 = vmax.f32 %v3814_v10, 0.0  ;;  %v2286_v9 = vpack.c.bf16 %v2234_v34, %v2230_v46  ;;  %v2219_v22 = vmax.f32 %v3806_v31, 0.0 }
 0x5ed   : > { %v1995_v54 = vadd.f32 %v1994_v4, %v4106_v38  ;;  %2308 = vmatprep.subr.bf16.mxu0 %v4109_v62  ;;  %v2242_v37 = vmax.f32 %v1993_v6, 0.0  ;;  %v2148_v8 = vadd.f32 %v2147_v13, %v4106_v38  ;;  %2349 = vmatprep.subr.bf16.mxu1 %v4110_v39  ;;  %v2244_v36 = vmax.f32 %v2146_v41, 0.0 }
 0x5ee   : > { %v1969_v38 = vadd.f32 %v3747_v23, %v4099_v7  ;;  %v1963_v6 = vadd.f32 %v3725_v35, %v4098_v60  ;;  %v2116_v23 = vadd.f32 %v3728_v40, %v4098_v60  ;;  %v2228_v35 = vmax.f32 %v3827_v33, 0.0  ;;  %v4113_v40 = vld [vmem:[#allocation43_spill] sm:$0xff] }
 0x5ef   : > { %v2243_v15 = vmax.f32 %v1995_v54, 0.0  ;;  %v2245_v5 = vmax.f32 %v2148_v8, 0.0  ;;  %v2290_v49 = vpack.c.bf16 %v2242_v37, %v2238_v19  ;;  %v2292_v52 = vpack.c.bf16 %v2244_v36, %v2240_v1  ;;  %v4114_v37 = vld [vmem:[#allocation42_spill] sm:$0xff] }
 0x5f0   : > { %2309 = vmatpush1.bf16.msra.mxu0 %v4111_v18  ;;  %2350 = vmatpush1.bf16.msra.mxu1 %v4112_v20  ;;  %v2283_v41 = vpack.c.bf16 %v2227_v43, %v2223_v44  ;;  %v1959_v7 = vadd.f32 %v3716_v30, %v4097_v55  ;;  %v2221_v10 = vmax.f32 %v3810_v48, 0.0  ;;  %v2222_v4 = vmax.f32 %v1969_v38, 0.0 }
 0x5f1   : > { %v2291_v56 = vpack.c.bf16 %v2243_v15, %v2239_v16  ;;  %v2293_v24 = vpack.c.bf16 %v2245_v5, %v2241_v11  ;;  %v2285_v51 = vpack.c.bf16 %v2229_v63, %v2225_v26  ;;  %v2112_v60 = vadd.f32 %v4113_v40, %v4097_v55 }
 0x5f2   : > { %v2215_v32 = vmax.f32 %v3798_v28, 0.0  ;;  %v2224_v45 = vmax.f32 %v2122_v0, 0.0  ;;  %v2217_v31 = vmax.f32 %v3802_v25, 0.0  ;;  %v2218_v33 = vmax.f32 %v1963_v6, 0.0 }
 0x5f3   : > { %2318 = vmatprep.subr.bf16.mxu0 %v2291_v56  ;;  %2359 = vmatprep.subr.bf16.mxu1 %v2293_v24  ;;  %v2282_v42 = vpack.c.bf16 %v2226_v50, %v2222_v4  ;;  %v2220_v59 = vmax.f32 %v2116_v23, 0.0  ;;  %v2214_v48 = vmax.f32 %v1959_v7, 0.0  ;;  %v2216_v29 = vmax.f32 %v2112_v60, 0.0 }
 0x5f4   : > { %2319 = vmatpush2.bf16.msra.mxu0 %v2290_v49  ;;  %2360 = vmatpush2.bf16.msra.mxu1 %v2292_v52  ;;  %v2279_v30 = vpack.c.bf16 %v2219_v22, %v2215_v32  ;;  %v2284_v54 = vpack.c.bf16 %v2228_v35, %v2224_v45  ;;  %v2281_v13 = vpack.c.bf16 %v2221_v10, %v2217_v31  ;;  %v2661_v25 = vld.sshfl [vmem:[%s3907_s4] sm:$0x33 pattern:$0x76325410] }
 0x5f5   : > { %2320 = vmatprep.subr.bf16.mxu0 %v2287_v21  ;;  %2361 = vmatprep.subr.bf16.mxu1 %v2289_v17  ;;  %v2278_v55 = vpack.c.bf16 %v2218_v33, %v2214_v48  ;;  %v2280_v28 = vpack.c.bf16 %v2220_v59, %v2216_v29 }
 0x5f8   : > { %2321 = vmatpush2.bf16.msra.mxu0 %v2286_v9  ;;  %2362 = vmatpush2.bf16.msra.mxu1 %v2288_v14 }
 0x5f9   : > { %2322 = vmatprep.subr.bf16.mxu0 %v2283_v41  ;;  %2363 = vmatprep.subr.bf16.mxu1 %v2285_v51 }
 0x5fc   : > { %2323 = vmatpush2.bf16.msra.mxu0 %v2282_v42  ;;  %2364 = vmatpush2.bf16.msra.mxu1 %v2284_v54 }
 0x5fd   : > { %2324 = vmatprep.subr.bf16.mxu0 %v2279_v30  ;;  %2365 = vmatprep.subr.bf16.mxu1 %v2281_v13 }
 0x600   : > { %2325 = vmatpush2.bf16.msra.mxu0 %v2278_v55  ;;  %2366 = vmatpush2.bf16.msra.mxu1 %v2280_v28 }
 0x603   : > { %2327 = vmatmul.mubr.bf16.vlgmr.msra.gmra.mxu0 %v2661_v25  ;;  %2368 = vmatmul.mubr.bf16.vlgmr.msra.gmra.mxu1 %v2661_v25 }
 0x6c3   : > { %v2328_v62 = vpop.f32.mrf.mxu0  ;;  %v2369_v58 = vpop.f32.mrf.mxu1 }
 0x6c4   : > { %v2329_v8 = vadd.f32 %v2328_v62, %v4114_v37  ;;  %v2370_v16 = vadd.f32 %v2369_v58, %v4114_v37 }
 0x6c5   : > { %v2330_v53 = vpop.f32.mrf.mxu0  ;;  %v2371_v2 = vpop.f32.mrf.mxu1 }
 0x6c6   : > { %v2331_v39 = vadd.f32 %v2330_v53, %v4114_v37  ;;  %v2372_v36 = vadd.f32 %v2371_v2, %v4114_v37 }
 0x6c7   : > { %v2332_v15 = vpop.f32.mrf.mxu0  ;;  %v2373_v19 = vpop.f32.mrf.mxu1 }
 0x6c8   : > { %v2380_v27 = vcombine.low %v2329_v8, %v2331_v39  ;;  %v2381_v11 = vcombine.low %v2370_v16, %v2372_v36 }
 0x6c9   : > { %v2333_v5 = vpop.f32.mrf.mxu0  ;;  %v2374_v18 = vpop.f32.mrf.mxu1 }
 0x6ca   : > { %2384 = vst [vmem:[%s3447_s16 + $0x10] sm:$0x77] %v2380_v27  ;;  %2385 = vst [vmem:[%s3447_s16 + $0x18] sm:$0x77] %v2381_v11 }
 0x6cb PF: > { %s16_s23 = sadd.s32 1, %s2684_s23   ;;  %s4115_s21 = smov %s2680_s22 }
 0x6cc   : > { %p13_p5 = scmp.ge.s32.totalorder %s16_s23, 4   ;;  %s4116_s22 = smov %s4118_s24 }
 0x6ce   :  { %15 = sbr.rel (!%p13_p5) target bundleno = 2 (0x2), region = 77 }

</bundles_post_ra>
